<compile_context>
chip_gen: v6e
topology: v6e:2x2x1
jax: 0.10.0
libtpu: 0.0.40
codegen_flags: <defaults>
</compile_context>

<pallas_src>
import jax
import jax.numpy as jnp
from jax.experimental import pallas as pl
from jax.experimental.pallas import tpu as pltpu

# ----------------------------- model config --------------------------------
VOCAB = 100
MAX_POS = 16
H = 32          # bert hidden size (nhid)
NH = 2          # attention heads
DH = H // NH    # head dim
FFN = 64        # intermediate size
NL = 2          # encoder layers
NOUT = 16       # TextEncoder projection size
BERT_EPS = 1e-12
LN_EPS = 1e-5   # nn.LayerNorm default


# ------------------------------ fused Pallas kernel -------------------------
def _text_encoder_kernel(
    x0_ref,        # (B*S, H)   token+position embeddings
    mask_ref,      # (B*S, B*S) additive attention bias (0 / -1e9), block-diagonal
    cls_ref,       # (B, B*S)   one-hot CLS-row selection matrix
    emb_g_ref, emb_b_ref,            # (1, H)
    wqkv_ref, bqkv_ref,              # (NL, H, 3H), (NL, 1, 3H)
    wo_ref, bo_ref,                  # (NL, H, H),  (NL, 1, H)
    ln1_g_ref, ln1_b_ref,            # (NL, 1, H)
    w1_ref, b1_ref,                  # (NL, H, FFN), (NL, 1, FFN)
    w2_ref, b2_ref,                  # (NL, FFN, H), (NL, 1, H)
    ln2_g_ref, ln2_b_ref,            # (NL, 1, H)
    pw_ref, pb_ref,                  # (H, NOUT), (1, NOUT)
    g_ref, b_ref,                    # (1, NOUT)
    o_ref,                           # (B, NOUT)
):
    def layer_norm(h, g, b, eps):
        mu = jnp.mean(h, axis=-1, keepdims=True)
        var = jnp.mean((h - mu) ** 2, axis=-1, keepdims=True)
        return (h - mu) * jax.lax.rsqrt(var + eps) * g + b

    scale = 1.0 / float(DH) ** 0.5
    mask = mask_ref[...]                                          # (BS, BS)

    # ---- embeddings LayerNorm ----
    x = x0_ref[...].astype(jnp.float32)
    x = layer_norm(x, emb_g_ref[...], emb_b_ref[...], BERT_EPS)

    # ---- transformer layers (static unroll; everything stays in vregs/VMEM) ----
    for l in range(NL):
        # fused QKV projection: one (BS, H) x (H, 3H) MXU push
        qkv = jnp.dot(x, wqkv_ref[l], preferred_element_type=jnp.float32)
        qkv = qkv + bqkv_ref[l]

        heads = []
        for hd in range(NH):
            q = qkv[:, hd * DH:(hd + 1) * DH]
            k = qkv[:, H + hd * DH: H + (hd + 1) * DH]
            v = qkv[:, 2 * H + hd * DH: 2 * H + (hd + 1) * DH]
            # contract on last axes of both operands: no materialized k.T
            s = jax.lax.dot_general(
                q, k, (((1,), (1,)), ((), ())),
                preferred_element_type=jnp.float32) * scale        # (BS, BS)
            # block-diagonal batch separation + key-padding mask (additive).
            # A fully-masked row cannot occur: each row always sees at least
            # its own batch's CLS key.
            s = s + mask
            s = s - jnp.max(s, axis=-1, keepdims=True)
            p = jnp.exp(s)
            p = p * pl.reciprocal(jnp.sum(p, axis=-1, keepdims=True), approx=True)
            heads.append(jnp.dot(p, v, preferred_element_type=jnp.float32))
        attn = jnp.concatenate(heads, axis=-1)                     # (BS, H)

        attn = jnp.dot(attn, wo_ref[l], preferred_element_type=jnp.float32)
        attn = attn + bo_ref[l]
        x = layer_norm(x + attn, ln1_g_ref[l], ln1_b_ref[l], BERT_EPS)

        # TODO(synk): HF BERT uses exact erf GELU; tanh approximation kept here
        # because it is guaranteed to lower on all TPU generations.
        ffn = jnp.dot(x, w1_ref[l], preferred_element_type=jnp.float32) + b1_ref[l]
        ffn = jax.nn.gelu(ffn, approximate=True)
        ffn = jnp.dot(ffn, w2_ref[l], preferred_element_type=jnp.float32) + b2_ref[l]
        x = layer_norm(x + ffn, ln2_g_ref[l], ln2_b_ref[l], BERT_EPS)

    # ---- head: CLS select (tiny selection matmul) -> Linear -> LayerNorm ----
    cls = jnp.dot(cls_ref[...], x, preferred_element_type=jnp.float32)   # (B, H)
    y = jnp.dot(cls, pw_ref[...], preferred_element_type=jnp.float32) + pb_ref[...]
    y = layer_norm(y, g_ref[...], b_ref[...], LN_EPS)
    o_ref[...] = y.astype(o_ref.dtype)


# ------------------------------ wrapper --------------------------------------
def text_encoder_forward(params, input_ids, attention_mask):
    B, S = input_ids.shape
    BS = B * S

    # glue: embedding gather (data-dependent row gather has no cheap BlockSpec
    # form at this size) + mask / CLS-selector prep — all tiny host-side XLA ops.
    x0 = (params["tok_emb"][input_ids] + params["pos_emb"][:S][None]).reshape(BS, H)
    x0 = x0.astype(jnp.float32)

    # additive attention bias: same batch AND key not padding -> 0, else -1e9
    same_batch = (jnp.arange(BS)[:, None] // S) == (jnp.arange(BS)[None, :] // S)
    key_valid = attention_mask.reshape(BS) > 0
    mask_bias = jnp.where(same_batch & key_valid[None, :], 0.0, -1e9)
    mask_bias = mask_bias.astype(jnp.float32)                     # (BS, BS)

    # one-hot selector picking row b*S (the CLS token of each batch element)
    cls_sel = jnp.zeros((B, BS), jnp.float32)
    cls_sel = cls_sel.at[jnp.arange(B), jnp.arange(B) * S].set(1.0)

    inputs = (
        x0, mask_bias, cls_sel,
        params["emb_ln_g"], params["emb_ln_b"],
        params["wqkv"], params["bqkv"], params["wo"], params["bo"],
        params["ln1_g"], params["ln1_b"],
        params["w1"], params["b1"], params["w2"], params["b2"],
        params["ln2_g"], params["ln2_b"],
        params["proj_w"], params["proj_b"], params["ln_g"], params["ln_b"],
    )

    vmem_spec = lambda: pl.BlockSpec(memory_space=pltpu.MemorySpace.VMEM)
    return pl.pallas_call(
        _text_encoder_kernel,
        out_shape=jax.ShapeDtypeStruct((B, NOUT), jnp.float32),
        in_specs=[vmem_spec() for _ in inputs],
        out_specs=vmem_spec(),
    )(*inputs)


# ------------------------------ params ----------------------------------------
def init_params(key):
    std = 0.02

    def nxt():
        nonlocal key
        key, sub = jax.random.split(key)
        return sub

    # synthetic, deterministic "BERT-lite" weights (pretrained HF weights are
    # not loadable in this sandbox); QKV weights generated directly fused.
    return {
        "tok_emb": jax.random.normal(nxt(), (VOCAB, H)) * std,
        "pos_emb": jax.random.normal(nxt(), (MAX_POS, H)) * std,
        "emb_ln_g": jnp.ones((1, H)), "emb_ln_b": jnp.zeros((1, H)),
        "wqkv": jax.random.normal(nxt(), (NL, H, 3 * H)) * std,
        "bqkv": jnp.zeros((NL, 1, 3 * H)),
        "wo": jax.random.normal(nxt(), (NL, H, H)) * std,
        "bo": jnp.zeros((NL, 1, H)),
        "ln1_g": jnp.ones((NL, 1, H)), "ln1_b": jnp.zeros((NL, 1, H)),
        "w1": jax.random.normal(nxt(), (NL, H, FFN)) * std,
        "b1": jnp.zeros((NL, 1, FFN)),
        "w2": jax.random.normal(nxt(), (NL, FFN, H)) * std,
        "b2": jnp.zeros((NL, 1, H)),
        "ln2_g": jnp.ones((NL, 1, H)), "ln2_b": jnp.zeros((NL, 1, H)),
        "proj_w": jax.random.normal(nxt(), (H, NOUT)) * std,
        "proj_b": jnp.zeros((1, NOUT)),
        "ln_g": jnp.ones((1, NOUT)), "ln_b": jnp.zeros((1, NOUT)),
    }


# ------------------------------ main -------------------------------------------
if __name__ == "__main__":
    key = jax.random.PRNGKey(0)
    kid, kparam = jax.random.split(key)

    B, S = 2, 8
    input_ids = jax.random.randint(kid, (B, S), 0, VOCAB, dtype=jnp.int32)
    attention_mask = jnp.array(
        [[1, 1, 1, 1, 1, 1, 0, 0],
         [1, 1, 1, 1, 1, 1, 1, 1]], dtype=jnp.int32)

    params = init_params(kparam)
    fwd = jax.jit(text_encoder_forward)
    out = fwd(params, input_ids, attention_mask)
    out = jax.block_until_ready(out)

    assert out.shape == (B, NOUT), out.shape
    assert out.dtype == jnp.float32
    assert bool(jnp.all(jnp.isfinite(out)))
    print("KERNEL_OK")
</pallas_src>

<mosaic_0001>
module attributes {stable_mosaic.version = 11 : i64} {
  func.func @_text_encoder_kernel(%arg0: memref<16x32xf32, #tpu.memory_space<vmem>>, %arg1: memref<16x16xf32, #tpu.memory_space<vmem>>, %arg2: memref<2x16xf32, #tpu.memory_space<vmem>>, %arg3: memref<1x32xf32, #tpu.memory_space<vmem>>, %arg4: memref<1x32xf32, #tpu.memory_space<vmem>>, %arg5: memref<2x32x96xf32, #tpu.memory_space<vmem>>, %arg6: memref<2x1x96xf32, #tpu.memory_space<vmem>>, %arg7: memref<2x32x32xf32, #tpu.memory_space<vmem>>, %arg8: memref<2x1x32xf32, #tpu.memory_space<vmem>>, %arg9: memref<2x1x32xf32, #tpu.memory_space<vmem>>, %arg10: memref<2x1x32xf32, #tpu.memory_space<vmem>>, %arg11: memref<2x32x64xf32, #tpu.memory_space<vmem>>, %arg12: memref<2x1x64xf32, #tpu.memory_space<vmem>>, %arg13: memref<2x64x32xf32, #tpu.memory_space<vmem>>, %arg14: memref<2x1x32xf32, #tpu.memory_space<vmem>>, %arg15: memref<2x1x32xf32, #tpu.memory_space<vmem>>, %arg16: memref<2x1x32xf32, #tpu.memory_space<vmem>>, %arg17: memref<32x16xf32, #tpu.memory_space<vmem>>, %arg18: memref<1x16xf32, #tpu.memory_space<vmem>>, %arg19: memref<1x16xf32, #tpu.memory_space<vmem>>, %arg20: memref<1x16xf32, #tpu.memory_space<vmem>>, %arg21: memref<2x16xf32, #tpu.memory_space<vmem>>) attributes {dimension_semantics = [], scalar_prefetch = 0 : i64, scratch_operands = 0 : i64, tpu.core_type = #tpu.core_type<tc>} {
    %c0 = arith.constant 0 : index
    %c0_0 = arith.constant 0 : index
    %0 = vector.load %arg1[%c0, %c0_0] : memref<16x16xf32, #tpu.memory_space<vmem>>, vector<16x16xf32>
    %c0_1 = arith.constant 0 : index
    %c0_2 = arith.constant 0 : index
    %1 = vector.load %arg0[%c0_1, %c0_2] : memref<16x32xf32, #tpu.memory_space<vmem>>, vector<16x32xf32>
    %c0_3 = arith.constant 0 : index
    %c0_4 = arith.constant 0 : index
    %2 = vector.load %arg3[%c0_3, %c0_4] : memref<1x32xf32, #tpu.memory_space<vmem>>, vector<1x32xf32>
    %c0_5 = arith.constant 0 : index
    %c0_6 = arith.constant 0 : index
    %3 = vector.load %arg4[%c0_5, %c0_6] : memref<1x32xf32, #tpu.memory_space<vmem>>, vector<1x32xf32>
    %cst = arith.constant dense<0.000000e+00> : vector<16xf32>
    %4 = vector.multi_reduction <add>, %1, %cst [1] : vector<16x32xf32> to vector<16xf32>
    %5 = vector.shape_cast %4 : vector<16xf32> to vector<16x1xf32>
    %cst_7 = arith.constant 3.200000e+01 : f32
    %6 = vector.broadcast %cst_7 : f32 to vector<16x1xf32>
    %7 = arith.divf %5, %6 : vector<16x1xf32>
    %8 = vector.broadcast %7 : vector<16x1xf32> to vector<16x32xf32>
    %9 = arith.subf %1, %8 : vector<16x32xf32>
    %10 = arith.mulf %9, %9 : vector<16x32xf32>
    %cst_8 = arith.constant dense<0.000000e+00> : vector<16xf32>
    %11 = vector.multi_reduction <add>, %10, %cst_8 [1] : vector<16x32xf32> to vector<16xf32>
    %12 = vector.shape_cast %11 : vector<16xf32> to vector<16x1xf32>
    %cst_9 = arith.constant 3.200000e+01 : f32
    %13 = vector.broadcast %cst_9 : f32 to vector<16x1xf32>
    %14 = arith.divf %12, %13 : vector<16x1xf32>
    %15 = vector.broadcast %7 : vector<16x1xf32> to vector<16x32xf32>
    %16 = arith.subf %1, %15 : vector<16x32xf32>
    %cst_10 = arith.constant 9.99999996E-13 : f32
    %17 = vector.broadcast %cst_10 : f32 to vector<16x1xf32>
    %18 = arith.addf %14, %17 : vector<16x1xf32>
    %19 = math.rsqrt %18 : vector<16x1xf32>
    %20 = vector.broadcast %19 : vector<16x1xf32> to vector<16x32xf32>
    %21 = arith.mulf %16, %20 : vector<16x32xf32>
    %22 = vector.broadcast %2 : vector<1x32xf32> to vector<16x32xf32>
    %23 = arith.mulf %21, %22 : vector<16x32xf32>
    %24 = vector.broadcast %3 : vector<1x32xf32> to vector<16x32xf32>
    %25 = arith.addf %23, %24 : vector<16x32xf32>
    %c0_11 = arith.constant 0 : index
    %c0_12 = arith.constant 0 : index
    %c0_13 = arith.constant 0 : index
    %26 = vector.load %arg5[%c0_11, %c0_12, %c0_13] : memref<2x32x96xf32, #tpu.memory_space<vmem>>, vector<1x32x96xf32>
    %27 = vector.shape_cast %26 : vector<1x32x96xf32> to vector<32x96xf32>
    %cst_14 = arith.constant dense<0.000000e+00> : vector<16x96xf32>
    %28 = tpu.matmul %25, %27, %cst_14 {dimension_numbers = #tpu.dot_dimension_numbers<[1], [0], [0], [1], [0, 0, 1, 1], [], []>} : vector<16x32xf32>, vector<32x96xf32>, vector<16x96xf32> -> vector<16x96xf32>
    %c0_15 = arith.constant 0 : index
    %c0_16 = arith.constant 0 : index
    %c0_17 = arith.constant 0 : index
    %29 = vector.load %arg6[%c0_15, %c0_16, %c0_17] : memref<2x1x96xf32, #tpu.memory_space<vmem>>, vector<1x1x96xf32>
    %30 = vector.shape_cast %29 : vector<1x1x96xf32> to vector<1x96xf32>
    %31 = vector.broadcast %30 : vector<1x96xf32> to vector<16x96xf32>
    %32 = arith.addf %28, %31 : vector<16x96xf32>
    %33 = vector.extract_strided_slice %32 {offsets = [0, 0], sizes = [16, 16], strides = [1, 1]} : vector<16x96xf32> to vector<16x16xf32>
    %34 = vector.extract_strided_slice %32 {offsets = [0, 32], sizes = [16, 16], strides = [1, 1]} : vector<16x96xf32> to vector<16x16xf32>
    %35 = vector.extract_strided_slice %32 {offsets = [0, 64], sizes = [16, 16], strides = [1, 1]} : vector<16x96xf32> to vector<16x16xf32>
    %cst_18 = arith.constant dense<0.000000e+00> : vector<16x16xf32>
    %36 = tpu.matmul %33, %34, %cst_18 {dimension_numbers = #tpu.dot_dimension_numbers<[1], [1], [0], [0], [0, 0, 1, 0], [], []>} : vector<16x16xf32>, vector<16x16xf32>, vector<16x16xf32> -> vector<16x16xf32>
    %cst_19 = arith.constant 2.500000e-01 : f32
    %37 = vector.broadcast %cst_19 : f32 to vector<16x16xf32>
    %38 = arith.mulf %36, %37 : vector<16x16xf32>
    %39 = arith.addf %38, %0 : vector<16x16xf32>
    %cst_20 = arith.constant dense<0xFF800000> : vector<16xf32>
    %40 = vector.multi_reduction <maximumf>, %39, %cst_20 [1] : vector<16x16xf32> to vector<16xf32>
    %41 = vector.shape_cast %40 : vector<16xf32> to vector<16x1xf32>
    %42 = vector.broadcast %41 : vector<16x1xf32> to vector<16x16xf32>
    %43 = arith.subf %39, %42 : vector<16x16xf32>
    %44 = math.exp %43 : vector<16x16xf32>
    %cst_21 = arith.constant dense<0.000000e+00> : vector<16xf32>
    %45 = vector.multi_reduction <add>, %44, %cst_21 [1] : vector<16x16xf32> to vector<16xf32>
    %46 = vector.shape_cast %45 : vector<16xf32> to vector<16x1xf32>
    %47 = tpu.reciprocal %46 {approx = true} : vector<16x1xf32> -> vector<16x1xf32>
    %48 = vector.broadcast %47 : vector<16x1xf32> to vector<16x16xf32>
    %49 = arith.mulf %44, %48 : vector<16x16xf32>
    %cst_22 = arith.constant dense<0.000000e+00> : vector<16x16xf32>
    %50 = tpu.matmul %49, %35, %cst_22 {dimension_numbers = #tpu.dot_dimension_numbers<[1], [0], [0], [1], [0, 0, 1, 1], [], []>} : vector<16x16xf32>, vector<16x16xf32>, vector<16x16xf32> -> vector<16x16xf32>
    %51 = vector.extract_strided_slice %32 {offsets = [0, 16], sizes = [16, 16], strides = [1, 1]} : vector<16x96xf32> to vector<16x16xf32>
    %52 = vector.extract_strided_slice %32 {offsets = [0, 48], sizes = [16, 16], strides = [1, 1]} : vector<16x96xf32> to vector<16x16xf32>
    %53 = vector.extract_strided_slice %32 {offsets = [0, 80], sizes = [16, 16], strides = [1, 1]} : vector<16x96xf32> to vector<16x16xf32>
    %cst_23 = arith.constant dense<0.000000e+00> : vector<16x16xf32>
    %54 = tpu.matmul %51, %52, %cst_23 {dimension_numbers = #tpu.dot_dimension_numbers<[1], [1], [0], [0], [0, 0, 1, 0], [], []>} : vector<16x16xf32>, vector<16x16xf32>, vector<16x16xf32> -> vector<16x16xf32>
    %cst_24 = arith.constant 2.500000e-01 : f32
    %55 = vector.broadcast %cst_24 : f32 to vector<16x16xf32>
    %56 = arith.mulf %54, %55 : vector<16x16xf32>
    %57 = arith.addf %56, %0 : vector<16x16xf32>
    %cst_25 = arith.constant dense<0xFF800000> : vector<16xf32>
    %58 = vector.multi_reduction <maximumf>, %57, %cst_25 [1] : vector<16x16xf32> to vector<16xf32>
    %59 = vector.shape_cast %58 : vector<16xf32> to vector<16x1xf32>
    %60 = vector.broadcast %59 : vector<16x1xf32> to vector<16x16xf32>
    %61 = arith.subf %57, %60 : vector<16x16xf32>
    %62 = math.exp %61 : vector<16x16xf32>
    %cst_26 = arith.constant dense<0.000000e+00> : vector<16xf32>
    %63 = vector.multi_reduction <add>, %62, %cst_26 [1] : vector<16x16xf32> to vector<16xf32>
    %64 = vector.shape_cast %63 : vector<16xf32> to vector<16x1xf32>
    %65 = tpu.reciprocal %64 {approx = true} : vector<16x1xf32> -> vector<16x1xf32>
    %66 = vector.broadcast %65 : vector<16x1xf32> to vector<16x16xf32>
    %67 = arith.mulf %62, %66 : vector<16x16xf32>
    %cst_27 = arith.constant dense<0.000000e+00> : vector<16x16xf32>
    %68 = tpu.matmul %67, %53, %cst_27 {dimension_numbers = #tpu.dot_dimension_numbers<[1], [0], [0], [1], [0, 0, 1, 1], [], []>} : vector<16x16xf32>, vector<16x16xf32>, vector<16x16xf32> -> vector<16x16xf32>
    %69 = tpu.concatenate %50, %68 in 1 : vector<16x16xf32>, vector<16x16xf32> -> vector<16x32xf32>
    %c0_28 = arith.constant 0 : index
    %c0_29 = arith.constant 0 : index
    %c0_30 = arith.constant 0 : index
    %70 = vector.load %arg7[%c0_28, %c0_29, %c0_30] : memref<2x32x32xf32, #tpu.memory_space<vmem>>, vector<1x32x32xf32>
    %71 = vector.shape_cast %70 : vector<1x32x32xf32> to vector<32x32xf32>
    %cst_31 = arith.constant dense<0.000000e+00> : vector<16x32xf32>
    %72 = tpu.matmul %69, %71, %cst_31 {dimension_numbers = #tpu.dot_dimension_numbers<[1], [0], [0], [1], [0, 0, 1, 1], [], []>} : vector<16x32xf32>, vector<32x32xf32>, vector<16x32xf32> -> vector<16x32xf32>
    %c0_32 = arith.constant 0 : index
    %c0_33 = arith.constant 0 : index
    %c0_34 = arith.constant 0 : index
    %73 = vector.load %arg8[%c0_32, %c0_33, %c0_34] : memref<2x1x32xf32, #tpu.memory_space<vmem>>, vector<1x1x32xf32>
    %74 = vector.shape_cast %73 : vector<1x1x32xf32> to vector<1x32xf32>
    %75 = vector.broadcast %74 : vector<1x32xf32> to vector<16x32xf32>
    %76 = arith.addf %72, %75 : vector<16x32xf32>
    %77 = arith.addf %25, %76 : vector<16x32xf32>
    %c0_35 = arith.constant 0 : index
    %c0_36 = arith.constant 0 : index
    %c0_37 = arith.constant 0 : index
    %78 = vector.load %arg9[%c0_35, %c0_36, %c0_37] : memref<2x1x32xf32, #tpu.memory_space<vmem>>, vector<1x1x32xf32>
    %79 = vector.shape_cast %78 : vector<1x1x32xf32> to vector<1x32xf32>
    %c0_38 = arith.constant 0 : index
    %c0_39 = arith.constant 0 : index
    %c0_40 = arith.constant 0 : index
    %80 = vector.load %arg10[%c0_38, %c0_39, %c0_40] : memref<2x1x32xf32, #tpu.memory_space<vmem>>, vector<1x1x32xf32>
    %81 = vector.shape_cast %80 : vector<1x1x32xf32> to vector<1x32xf32>
    %cst_41 = arith.constant dense<0.000000e+00> : vector<16xf32>
    %82 = vector.multi_reduction <add>, %77, %cst_41 [1] : vector<16x32xf32> to vector<16xf32>
    %83 = vector.shape_cast %82 : vector<16xf32> to vector<16x1xf32>
    %cst_42 = arith.constant 3.200000e+01 : f32
    %84 = vector.broadcast %cst_42 : f32 to vector<16x1xf32>
    %85 = arith.divf %83, %84 : vector<16x1xf32>
    %86 = vector.broadcast %85 : vector<16x1xf32> to vector<16x32xf32>
    %87 = arith.subf %77, %86 : vector<16x32xf32>
    %88 = arith.mulf %87, %87 : vector<16x32xf32>
    %cst_43 = arith.constant dense<0.000000e+00> : vector<16xf32>
    %89 = vector.multi_reduction <add>, %88, %cst_43 [1] : vector<16x32xf32> to vector<16xf32>
    %90 = vector.shape_cast %89 : vector<16xf32> to vector<16x1xf32>
    %cst_44 = arith.constant 3.200000e+01 : f32
    %91 = vector.broadcast %cst_44 : f32 to vector<16x1xf32>
    %92 = arith.divf %90, %91 : vector<16x1xf32>
    %93 = vector.broadcast %85 : vector<16x1xf32> to vector<16x32xf32>
    %94 = arith.subf %77, %93 : vector<16x32xf32>
    %cst_45 = arith.constant 9.99999996E-13 : f32
    %95 = vector.broadcast %cst_45 : f32 to vector<16x1xf32>
    %96 = arith.addf %92, %95 : vector<16x1xf32>
    %97 = math.rsqrt %96 : vector<16x1xf32>
    %98 = vector.broadcast %97 : vector<16x1xf32> to vector<16x32xf32>
    %99 = arith.mulf %94, %98 : vector<16x32xf32>
    %100 = vector.broadcast %79 : vector<1x32xf32> to vector<16x32xf32>
    %101 = arith.mulf %99, %100 : vector<16x32xf32>
    %102 = vector.broadcast %81 : vector<1x32xf32> to vector<16x32xf32>
    %103 = arith.addf %101, %102 : vector<16x32xf32>
    %c0_46 = arith.constant 0 : index
    %c0_47 = arith.constant 0 : index
    %c0_48 = arith.constant 0 : index
    %104 = vector.load %arg11[%c0_46, %c0_47, %c0_48] : memref<2x32x64xf32, #tpu.memory_space<vmem>>, vector<1x32x64xf32>
    %105 = vector.shape_cast %104 : vector<1x32x64xf32> to vector<32x64xf32>
    %cst_49 = arith.constant dense<0.000000e+00> : vector<16x64xf32>
    %106 = tpu.matmul %103, %105, %cst_49 {dimension_numbers = #tpu.dot_dimension_numbers<[1], [0], [0], [1], [0, 0, 1, 1], [], []>} : vector<16x32xf32>, vector<32x64xf32>, vector<16x64xf32> -> vector<16x64xf32>
    %c0_50 = arith.constant 0 : index
    %c0_51 = arith.constant 0 : index
    %c0_52 = arith.constant 0 : index
    %107 = vector.load %arg12[%c0_50, %c0_51, %c0_52] : memref<2x1x64xf32, #tpu.memory_space<vmem>>, vector<1x1x64xf32>
    %108 = vector.shape_cast %107 : vector<1x1x64xf32> to vector<1x64xf32>
    %109 = vector.broadcast %108 : vector<1x64xf32> to vector<16x64xf32>
    %110 = arith.addf %106, %109 : vector<16x64xf32>
    %111 = arith.mulf %110, %110 : vector<16x64xf32>
    %112 = arith.mulf %110, %111 : vector<16x64xf32>
    %cst_53 = arith.constant 4.471500e-02 : f32
    %113 = vector.broadcast %cst_53 : f32 to vector<16x64xf32>
    %114 = arith.mulf %113, %112 : vector<16x64xf32>
    %115 = arith.addf %110, %114 : vector<16x64xf32>
    %cst_54 = arith.constant 0.797884583 : f32
    %116 = vector.broadcast %cst_54 : f32 to vector<16x64xf32>
    %117 = arith.mulf %116, %115 : vector<16x64xf32>
    %118 = math.tanh %117 : vector<16x64xf32>
    %cst_55 = arith.constant 1.000000e+00 : f32
    %119 = vector.broadcast %cst_55 : f32 to vector<16x64xf32>
    %120 = arith.addf %119, %118 : vector<16x64xf32>
    %cst_56 = arith.constant 5.000000e-01 : f32
    %121 = vector.broadcast %cst_56 : f32 to vector<16x64xf32>
    %122 = arith.mulf %121, %120 : vector<16x64xf32>
    %123 = arith.mulf %110, %122 : vector<16x64xf32>
    %c0_57 = arith.constant 0 : index
    %c0_58 = arith.constant 0 : index
    %c0_59 = arith.constant 0 : index
    %124 = vector.load %arg13[%c0_57, %c0_58, %c0_59] : memref<2x64x32xf32, #tpu.memory_space<vmem>>, vector<1x64x32xf32>
    %125 = vector.shape_cast %124 : vector<1x64x32xf32> to vector<64x32xf32>
    %cst_60 = arith.constant dense<0.000000e+00> : vector<16x32xf32>
    %126 = tpu.matmul %123, %125, %cst_60 {dimension_numbers = #tpu.dot_dimension_numbers<[1], [0], [0], [1], [0, 0, 1, 1], [], []>} : vector<16x64xf32>, vector<64x32xf32>, vector<16x32xf32> -> vector<16x32xf32>
    %c0_61 = arith.constant 0 : index
    %c0_62 = arith.constant 0 : index
    %c0_63 = arith.constant 0 : index
    %127 = vector.load %arg14[%c0_61, %c0_62, %c0_63] : memref<2x1x32xf32, #tpu.memory_space<vmem>>, vector<1x1x32xf32>
    %128 = vector.shape_cast %127 : vector<1x1x32xf32> to vector<1x32xf32>
    %129 = vector.broadcast %128 : vector<1x32xf32> to vector<16x32xf32>
    %130 = arith.addf %126, %129 : vector<16x32xf32>
    %131 = arith.addf %103, %130 : vector<16x32xf32>
    %c0_64 = arith.constant 0 : index
    %c0_65 = arith.constant 0 : index
    %c0_66 = arith.constant 0 : index
    %132 = vector.load %arg15[%c0_64, %c0_65, %c0_66] : memref<2x1x32xf32, #tpu.memory_space<vmem>>, vector<1x1x32xf32>
    %133 = vector.shape_cast %132 : vector<1x1x32xf32> to vector<1x32xf32>
    %c0_67 = arith.constant 0 : index
    %c0_68 = arith.constant 0 : index
    %c0_69 = arith.constant 0 : index
    %134 = vector.load %arg16[%c0_67, %c0_68, %c0_69] : memref<2x1x32xf32, #tpu.memory_space<vmem>>, vector<1x1x32xf32>
    %135 = vector.shape_cast %134 : vector<1x1x32xf32> to vector<1x32xf32>
    %cst_70 = arith.constant dense<0.000000e+00> : vector<16xf32>
    %136 = vector.multi_reduction <add>, %131, %cst_70 [1] : vector<16x32xf32> to vector<16xf32>
    %137 = vector.shape_cast %136 : vector<16xf32> to vector<16x1xf32>
    %cst_71 = arith.constant 3.200000e+01 : f32
    %138 = vector.broadcast %cst_71 : f32 to vector<16x1xf32>
    %139 = arith.divf %137, %138 : vector<16x1xf32>
    %140 = vector.broadcast %139 : vector<16x1xf32> to vector<16x32xf32>
    %141 = arith.subf %131, %140 : vector<16x32xf32>
    %142 = arith.mulf %141, %141 : vector<16x32xf32>
    %cst_72 = arith.constant dense<0.000000e+00> : vector<16xf32>
    %143 = vector.multi_reduction <add>, %142, %cst_72 [1] : vector<16x32xf32> to vector<16xf32>
    %144 = vector.shape_cast %143 : vector<16xf32> to vector<16x1xf32>
    %cst_73 = arith.constant 3.200000e+01 : f32
    %145 = vector.broadcast %cst_73 : f32 to vector<16x1xf32>
    %146 = arith.divf %144, %145 : vector<16x1xf32>
    %147 = vector.broadcast %139 : vector<16x1xf32> to vector<16x32xf32>
    %148 = arith.subf %131, %147 : vector<16x32xf32>
    %cst_74 = arith.constant 9.99999996E-13 : f32
    %149 = vector.broadcast %cst_74 : f32 to vector<16x1xf32>
    %150 = arith.addf %146, %149 : vector<16x1xf32>
    %151 = math.rsqrt %150 : vector<16x1xf32>
    %152 = vector.broadcast %151 : vector<16x1xf32> to vector<16x32xf32>
    %153 = arith.mulf %148, %152 : vector<16x32xf32>
    %154 = vector.broadcast %133 : vector<1x32xf32> to vector<16x32xf32>
    %155 = arith.mulf %153, %154 : vector<16x32xf32>
    %156 = vector.broadcast %135 : vector<1x32xf32> to vector<16x32xf32>
    %157 = arith.addf %155, %156 : vector<16x32xf32>
    %c1 = arith.constant 1 : index
    %c0_75 = arith.constant 0 : index
    %c0_76 = arith.constant 0 : index
    %158 = vector.load %arg5[%c1, %c0_75, %c0_76] : memref<2x32x96xf32, #tpu.memory_space<vmem>>, vector<1x32x96xf32>
    %159 = vector.shape_cast %158 : vector<1x32x96xf32> to vector<32x96xf32>
    %cst_77 = arith.constant dense<0.000000e+00> : vector<16x96xf32>
    %160 = tpu.matmul %157, %159, %cst_77 {dimension_numbers = #tpu.dot_dimension_numbers<[1], [0], [0], [1], [0, 0, 1, 1], [], []>} : vector<16x32xf32>, vector<32x96xf32>, vector<16x96xf32> -> vector<16x96xf32>
    %c1_78 = arith.constant 1 : index
    %c0_79 = arith.constant 0 : index
    %c0_80 = arith.constant 0 : index
    %161 = vector.load %arg6[%c1_78, %c0_79, %c0_80] : memref<2x1x96xf32, #tpu.memory_space<vmem>>, vector<1x1x96xf32>
    %162 = vector.shape_cast %161 : vector<1x1x96xf32> to vector<1x96xf32>
    %163 = vector.broadcast %162 : vector<1x96xf32> to vector<16x96xf32>
    %164 = arith.addf %160, %163 : vector<16x96xf32>
    %165 = vector.extract_strided_slice %164 {offsets = [0, 0], sizes = [16, 16], strides = [1, 1]} : vector<16x96xf32> to vector<16x16xf32>
    %166 = vector.extract_strided_slice %164 {offsets = [0, 32], sizes = [16, 16], strides = [1, 1]} : vector<16x96xf32> to vector<16x16xf32>
    %167 = vector.extract_strided_slice %164 {offsets = [0, 64], sizes = [16, 16], strides = [1, 1]} : vector<16x96xf32> to vector<16x16xf32>
    %cst_81 = arith.constant dense<0.000000e+00> : vector<16x16xf32>
    %168 = tpu.matmul %165, %166, %cst_81 {dimension_numbers = #tpu.dot_dimension_numbers<[1], [1], [0], [0], [0, 0, 1, 0], [], []>} : vector<16x16xf32>, vector<16x16xf32>, vector<16x16xf32> -> vector<16x16xf32>
    %cst_82 = arith.constant 2.500000e-01 : f32
    %169 = vector.broadcast %cst_82 : f32 to vector<16x16xf32>
    %170 = arith.mulf %168, %169 : vector<16x16xf32>
    %171 = arith.addf %170, %0 : vector<16x16xf32>
    %cst_83 = arith.constant dense<0xFF800000> : vector<16xf32>
    %172 = vector.multi_reduction <maximumf>, %171, %cst_83 [1] : vector<16x16xf32> to vector<16xf32>
    %173 = vector.shape_cast %172 : vector<16xf32> to vector<16x1xf32>
    %174 = vector.broadcast %173 : vector<16x1xf32> to vector<16x16xf32>
    %175 = arith.subf %171, %174 : vector<16x16xf32>
    %176 = math.exp %175 : vector<16x16xf32>
    %cst_84 = arith.constant dense<0.000000e+00> : vector<16xf32>
    %177 = vector.multi_reduction <add>, %176, %cst_84 [1] : vector<16x16xf32> to vector<16xf32>
    %178 = vector.shape_cast %177 : vector<16xf32> to vector<16x1xf32>
    %179 = tpu.reciprocal %178 {approx = true} : vector<16x1xf32> -> vector<16x1xf32>
    %180 = vector.broadcast %179 : vector<16x1xf32> to vector<16x16xf32>
    %181 = arith.mulf %176, %180 : vector<16x16xf32>
    %cst_85 = arith.constant dense<0.000000e+00> : vector<16x16xf32>
    %182 = tpu.matmul %181, %167, %cst_85 {dimension_numbers = #tpu.dot_dimension_numbers<[1], [0], [0], [1], [0, 0, 1, 1], [], []>} : vector<16x16xf32>, vector<16x16xf32>, vector<16x16xf32> -> vector<16x16xf32>
    %183 = vector.extract_strided_slice %164 {offsets = [0, 16], sizes = [16, 16], strides = [1, 1]} : vector<16x96xf32> to vector<16x16xf32>
    %184 = vector.extract_strided_slice %164 {offsets = [0, 48], sizes = [16, 16], strides = [1, 1]} : vector<16x96xf32> to vector<16x16xf32>
    %185 = vector.extract_strided_slice %164 {offsets = [0, 80], sizes = [16, 16], strides = [1, 1]} : vector<16x96xf32> to vector<16x16xf32>
    %cst_86 = arith.constant dense<0.000000e+00> : vector<16x16xf32>
    %186 = tpu.matmul %183, %184, %cst_86 {dimension_numbers = #tpu.dot_dimension_numbers<[1], [1], [0], [0], [0, 0, 1, 0], [], []>} : vector<16x16xf32>, vector<16x16xf32>, vector<16x16xf32> -> vector<16x16xf32>
    %cst_87 = arith.constant 2.500000e-01 : f32
    %187 = vector.broadcast %cst_87 : f32 to vector<16x16xf32>
    %188 = arith.mulf %186, %187 : vector<16x16xf32>
    %189 = arith.addf %188, %0 : vector<16x16xf32>
    %cst_88 = arith.constant dense<0xFF800000> : vector<16xf32>
    %190 = vector.multi_reduction <maximumf>, %189, %cst_88 [1] : vector<16x16xf32> to vector<16xf32>
    %191 = vector.shape_cast %190 : vector<16xf32> to vector<16x1xf32>
    %192 = vector.broadcast %191 : vector<16x1xf32> to vector<16x16xf32>
    %193 = arith.subf %189, %192 : vector<16x16xf32>
    %194 = math.exp %193 : vector<16x16xf32>
    %cst_89 = arith.constant dense<0.000000e+00> : vector<16xf32>
    %195 = vector.multi_reduction <add>, %194, %cst_89 [1] : vector<16x16xf32> to vector<16xf32>
    %196 = vector.shape_cast %195 : vector<16xf32> to vector<16x1xf32>
    %197 = tpu.reciprocal %196 {approx = true} : vector<16x1xf32> -> vector<16x1xf32>
    %198 = vector.broadcast %197 : vector<16x1xf32> to vector<16x16xf32>
    %199 = arith.mulf %194, %198 : vector<16x16xf32>
    %cst_90 = arith.constant dense<0.000000e+00> : vector<16x16xf32>
    %200 = tpu.matmul %199, %185, %cst_90 {dimension_numbers = #tpu.dot_dimension_numbers<[1], [0], [0], [1], [0, 0, 1, 1], [], []>} : vector<16x16xf32>, vector<16x16xf32>, vector<16x16xf32> -> vector<16x16xf32>
    %201 = tpu.concatenate %182, %200 in 1 : vector<16x16xf32>, vector<16x16xf32> -> vector<16x32xf32>
    %c1_91 = arith.constant 1 : index
    %c0_92 = arith.constant 0 : index
    %c0_93 = arith.constant 0 : index
    %202 = vector.load %arg7[%c1_91, %c0_92, %c0_93] : memref<2x32x32xf32, #tpu.memory_space<vmem>>, vector<1x32x32xf32>
    %203 = vector.shape_cast %202 : vector<1x32x32xf32> to vector<32x32xf32>
    %cst_94 = arith.constant dense<0.000000e+00> : vector<16x32xf32>
    %204 = tpu.matmul %201, %203, %cst_94 {dimension_numbers = #tpu.dot_dimension_numbers<[1], [0], [0], [1], [0, 0, 1, 1], [], []>} : vector<16x32xf32>, vector<32x32xf32>, vector<16x32xf32> -> vector<16x32xf32>
    %c1_95 = arith.constant 1 : index
    %c0_96 = arith.constant 0 : index
    %c0_97 = arith.constant 0 : index
    %205 = vector.load %arg8[%c1_95, %c0_96, %c0_97] : memref<2x1x32xf32, #tpu.memory_space<vmem>>, vector<1x1x32xf32>
    %206 = vector.shape_cast %205 : vector<1x1x32xf32> to vector<1x32xf32>
    %207 = vector.broadcast %206 : vector<1x32xf32> to vector<16x32xf32>
    %208 = arith.addf %204, %207 : vector<16x32xf32>
    %209 = arith.addf %157, %208 : vector<16x32xf32>
    %c1_98 = arith.constant 1 : index
    %c0_99 = arith.constant 0 : index
    %c0_100 = arith.constant 0 : index
    %210 = vector.load %arg9[%c1_98, %c0_99, %c0_100] : memref<2x1x32xf32, #tpu.memory_space<vmem>>, vector<1x1x32xf32>
    %211 = vector.shape_cast %210 : vector<1x1x32xf32> to vector<1x32xf32>
    %c1_101 = arith.constant 1 : index
    %c0_102 = arith.constant 0 : index
    %c0_103 = arith.constant 0 : index
    %212 = vector.load %arg10[%c1_101, %c0_102, %c0_103] : memref<2x1x32xf32, #tpu.memory_space<vmem>>, vector<1x1x32xf32>
    %213 = vector.shape_cast %212 : vector<1x1x32xf32> to vector<1x32xf32>
    %cst_104 = arith.constant dense<0.000000e+00> : vector<16xf32>
    %214 = vector.multi_reduction <add>, %209, %cst_104 [1] : vector<16x32xf32> to vector<16xf32>
    %215 = vector.shape_cast %214 : vector<16xf32> to vector<16x1xf32>
    %cst_105 = arith.constant 3.200000e+01 : f32
    %216 = vector.broadcast %cst_105 : f32 to vector<16x1xf32>
    %217 = arith.divf %215, %216 : vector<16x1xf32>
    %218 = vector.broadcast %217 : vector<16x1xf32> to vector<16x32xf32>
    %219 = arith.subf %209, %218 : vector<16x32xf32>
    %220 = arith.mulf %219, %219 : vector<16x32xf32>
    %cst_106 = arith.constant dense<0.000000e+00> : vector<16xf32>
    %221 = vector.multi_reduction <add>, %220, %cst_106 [1] : vector<16x32xf32> to vector<16xf32>
    %222 = vector.shape_cast %221 : vector<16xf32> to vector<16x1xf32>
    %cst_107 = arith.constant 3.200000e+01 : f32
    %223 = vector.broadcast %cst_107 : f32 to vector<16x1xf32>
    %224 = arith.divf %222, %223 : vector<16x1xf32>
    %225 = vector.broadcast %217 : vector<16x1xf32> to vector<16x32xf32>
    %226 = arith.subf %209, %225 : vector<16x32xf32>
    %cst_108 = arith.constant 9.99999996E-13 : f32
    %227 = vector.broadcast %cst_108 : f32 to vector<16x1xf32>
    %228 = arith.addf %224, %227 : vector<16x1xf32>
    %229 = math.rsqrt %228 : vector<16x1xf32>
    %230 = vector.broadcast %229 : vector<16x1xf32> to vector<16x32xf32>
    %231 = arith.mulf %226, %230 : vector<16x32xf32>
    %232 = vector.broadcast %211 : vector<1x32xf32> to vector<16x32xf32>
    %233 = arith.mulf %231, %232 : vector<16x32xf32>
    %234 = vector.broadcast %213 : vector<1x32xf32> to vector<16x32xf32>
    %235 = arith.addf %233, %234 : vector<16x32xf32>
    %c1_109 = arith.constant 1 : index
    %c0_110 = arith.constant 0 : index
    %c0_111 = arith.constant 0 : index
    %236 = vector.load %arg11[%c1_109, %c0_110, %c0_111] : memref<2x32x64xf32, #tpu.memory_space<vmem>>, vector<1x32x64xf32>
    %237 = vector.shape_cast %236 : vector<1x32x64xf32> to vector<32x64xf32>
    %cst_112 = arith.constant dense<0.000000e+00> : vector<16x64xf32>
    %238 = tpu.matmul %235, %237, %cst_112 {dimension_numbers = #tpu.dot_dimension_numbers<[1], [0], [0], [1], [0, 0, 1, 1], [], []>} : vector<16x32xf32>, vector<32x64xf32>, vector<16x64xf32> -> vector<16x64xf32>
    %c1_113 = arith.constant 1 : index
    %c0_114 = arith.constant 0 : index
    %c0_115 = arith.constant 0 : index
    %239 = vector.load %arg12[%c1_113, %c0_114, %c0_115] : memref<2x1x64xf32, #tpu.memory_space<vmem>>, vector<1x1x64xf32>
    %240 = vector.shape_cast %239 : vector<1x1x64xf32> to vector<1x64xf32>
    %241 = vector.broadcast %240 : vector<1x64xf32> to vector<16x64xf32>
    %242 = arith.addf %238, %241 : vector<16x64xf32>
    %243 = arith.mulf %242, %242 : vector<16x64xf32>
    %244 = arith.mulf %242, %243 : vector<16x64xf32>
    %cst_116 = arith.constant 4.471500e-02 : f32
    %245 = vector.broadcast %cst_116 : f32 to vector<16x64xf32>
    %246 = arith.mulf %245, %244 : vector<16x64xf32>
    %247 = arith.addf %242, %246 : vector<16x64xf32>
    %cst_117 = arith.constant 0.797884583 : f32
    %248 = vector.broadcast %cst_117 : f32 to vector<16x64xf32>
    %249 = arith.mulf %248, %247 : vector<16x64xf32>
    %250 = math.tanh %249 : vector<16x64xf32>
    %cst_118 = arith.constant 1.000000e+00 : f32
    %251 = vector.broadcast %cst_118 : f32 to vector<16x64xf32>
    %252 = arith.addf %251, %250 : vector<16x64xf32>
    %cst_119 = arith.constant 5.000000e-01 : f32
    %253 = vector.broadcast %cst_119 : f32 to vector<16x64xf32>
    %254 = arith.mulf %253, %252 : vector<16x64xf32>
    %255 = arith.mulf %242, %254 : vector<16x64xf32>
    %c1_120 = arith.constant 1 : index
    %c0_121 = arith.constant 0 : index
    %c0_122 = arith.constant 0 : index
    %256 = vector.load %arg13[%c1_120, %c0_121, %c0_122] : memref<2x64x32xf32, #tpu.memory_space<vmem>>, vector<1x64x32xf32>
    %257 = vector.shape_cast %256 : vector<1x64x32xf32> to vector<64x32xf32>
    %cst_123 = arith.constant dense<0.000000e+00> : vector<16x32xf32>
    %258 = tpu.matmul %255, %257, %cst_123 {dimension_numbers = #tpu.dot_dimension_numbers<[1], [0], [0], [1], [0, 0, 1, 1], [], []>} : vector<16x64xf32>, vector<64x32xf32>, vector<16x32xf32> -> vector<16x32xf32>
    %c1_124 = arith.constant 1 : index
    %c0_125 = arith.constant 0 : index
    %c0_126 = arith.constant 0 : index
    %259 = vector.load %arg14[%c1_124, %c0_125, %c0_126] : memref<2x1x32xf32, #tpu.memory_space<vmem>>, vector<1x1x32xf32>
    %260 = vector.shape_cast %259 : vector<1x1x32xf32> to vector<1x32xf32>
    %261 = vector.broadcast %260 : vector<1x32xf32> to vector<16x32xf32>
    %262 = arith.addf %258, %261 : vector<16x32xf32>
    %263 = arith.addf %235, %262 : vector<16x32xf32>
    %c1_127 = arith.constant 1 : index
    %c0_128 = arith.constant 0 : index
    %c0_129 = arith.constant 0 : index
    %264 = vector.load %arg15[%c1_127, %c0_128, %c0_129] : memref<2x1x32xf32, #tpu.memory_space<vmem>>, vector<1x1x32xf32>
    %265 = vector.shape_cast %264 : vector<1x1x32xf32> to vector<1x32xf32>
    %c1_130 = arith.constant 1 : index
    %c0_131 = arith.constant 0 : index
    %c0_132 = arith.constant 0 : index
    %266 = vector.load %arg16[%c1_130, %c0_131, %c0_132] : memref<2x1x32xf32, #tpu.memory_space<vmem>>, vector<1x1x32xf32>
    %267 = vector.shape_cast %266 : vector<1x1x32xf32> to vector<1x32xf32>
    %cst_133 = arith.constant dense<0.000000e+00> : vector<16xf32>
    %268 = vector.multi_reduction <add>, %263, %cst_133 [1] : vector<16x32xf32> to vector<16xf32>
    %269 = vector.shape_cast %268 : vector<16xf32> to vector<16x1xf32>
    %cst_134 = arith.constant 3.200000e+01 : f32
    %270 = vector.broadcast %cst_134 : f32 to vector<16x1xf32>
    %271 = arith.divf %269, %270 : vector<16x1xf32>
    %272 = vector.broadcast %271 : vector<16x1xf32> to vector<16x32xf32>
    %273 = arith.subf %263, %272 : vector<16x32xf32>
    %274 = arith.mulf %273, %273 : vector<16x32xf32>
    %cst_135 = arith.constant dense<0.000000e+00> : vector<16xf32>
    %275 = vector.multi_reduction <add>, %274, %cst_135 [1] : vector<16x32xf32> to vector<16xf32>
    %276 = vector.shape_cast %275 : vector<16xf32> to vector<16x1xf32>
    %cst_136 = arith.constant 3.200000e+01 : f32
    %277 = vector.broadcast %cst_136 : f32 to vector<16x1xf32>
    %278 = arith.divf %276, %277 : vector<16x1xf32>
    %279 = vector.broadcast %271 : vector<16x1xf32> to vector<16x32xf32>
    %280 = arith.subf %263, %279 : vector<16x32xf32>
    %cst_137 = arith.constant 9.99999996E-13 : f32
    %281 = vector.broadcast %cst_137 : f32 to vector<16x1xf32>
    %282 = arith.addf %278, %281 : vector<16x1xf32>
    %283 = math.rsqrt %282 : vector<16x1xf32>
    %284 = vector.broadcast %283 : vector<16x1xf32> to vector<16x32xf32>
    %285 = arith.mulf %280, %284 : vector<16x32xf32>
    %286 = vector.broadcast %265 : vector<1x32xf32> to vector<16x32xf32>
    %287 = arith.mulf %285, %286 : vector<16x32xf32>
    %288 = vector.broadcast %267 : vector<1x32xf32> to vector<16x32xf32>
    %289 = arith.addf %287, %288 : vector<16x32xf32>
    %c0_138 = arith.constant 0 : index
    %c0_139 = arith.constant 0 : index
    %290 = vector.load %arg2[%c0_138, %c0_139] : memref<2x16xf32, #tpu.memory_space<vmem>>, vector<2x16xf32>
    %cst_140 = arith.constant dense<0.000000e+00> : vector<2x32xf32>
    %291 = tpu.matmul %290, %289, %cst_140 {dimension_numbers = #tpu.dot_dimension_numbers<[1], [0], [0], [1], [0, 0, 1, 1], [], []>} : vector<2x16xf32>, vector<16x32xf32>, vector<2x32xf32> -> vector<2x32xf32>
    %c0_141 = arith.constant 0 : index
    %c0_142 = arith.constant 0 : index
    %292 = vector.load %arg17[%c0_141, %c0_142] : memref<32x16xf32, #tpu.memory_space<vmem>>, vector<32x16xf32>
    %cst_143 = arith.constant dense<0.000000e+00> : vector<2x16xf32>
    %293 = tpu.matmul %291, %292, %cst_143 {dimension_numbers = #tpu.dot_dimension_numbers<[1], [0], [0], [1], [0, 0, 1, 1], [], []>} : vector<2x32xf32>, vector<32x16xf32>, vector<2x16xf32> -> vector<2x16xf32>
    %c0_144 = arith.constant 0 : index
    %c0_145 = arith.constant 0 : index
    %294 = vector.load %arg18[%c0_144, %c0_145] : memref<1x16xf32, #tpu.memory_space<vmem>>, vector<1x16xf32>
    %295 = vector.broadcast %294 : vector<1x16xf32> to vector<2x16xf32>
    %296 = arith.addf %293, %295 : vector<2x16xf32>
    %c0_146 = arith.constant 0 : index
    %c0_147 = arith.constant 0 : index
    %297 = vector.load %arg19[%c0_146, %c0_147] : memref<1x16xf32, #tpu.memory_space<vmem>>, vector<1x16xf32>
    %c0_148 = arith.constant 0 : index
    %c0_149 = arith.constant 0 : index
    %298 = vector.load %arg20[%c0_148, %c0_149] : memref<1x16xf32, #tpu.memory_space<vmem>>, vector<1x16xf32>
    %cst_150 = arith.constant dense<0.000000e+00> : vector<2xf32>
    %299 = vector.multi_reduction <add>, %296, %cst_150 [1] : vector<2x16xf32> to vector<2xf32>
    %300 = vector.shape_cast %299 : vector<2xf32> to vector<2x1xf32>
    %cst_151 = arith.constant 1.600000e+01 : f32
    %301 = vector.broadcast %cst_151 : f32 to vector<2x1xf32>
    %302 = arith.divf %300, %301 : vector<2x1xf32>
    %303 = vector.broadcast %302 : vector<2x1xf32> to vector<2x16xf32>
    %304 = arith.subf %296, %303 : vector<2x16xf32>
    %305 = arith.mulf %304, %304 : vector<2x16xf32>
    %cst_152 = arith.constant dense<0.000000e+00> : vector<2xf32>
    %306 = vector.multi_reduction <add>, %305, %cst_152 [1] : vector<2x16xf32> to vector<2xf32>
    %307 = vector.shape_cast %306 : vector<2xf32> to vector<2x1xf32>
    %cst_153 = arith.constant 1.600000e+01 : f32
    %308 = vector.broadcast %cst_153 : f32 to vector<2x1xf32>
    %309 = arith.divf %307, %308 : vector<2x1xf32>
    %310 = vector.broadcast %302 : vector<2x1xf32> to vector<2x16xf32>
    %311 = arith.subf %296, %310 : vector<2x16xf32>
    %cst_154 = arith.constant 9.99999974E-6 : f32
    %312 = vector.broadcast %cst_154 : f32 to vector<2x1xf32>
    %313 = arith.addf %309, %312 : vector<2x1xf32>
    %314 = math.rsqrt %313 : vector<2x1xf32>
    %315 = vector.broadcast %314 : vector<2x1xf32> to vector<2x16xf32>
    %316 = arith.mulf %311, %315 : vector<2x16xf32>
    %317 = vector.broadcast %297 : vector<1x16xf32> to vector<2x16xf32>
    %318 = arith.mulf %316, %317 : vector<2x16xf32>
    %319 = vector.broadcast %298 : vector<1x16xf32> to vector<2x16xf32>
    %320 = arith.addf %318, %319 : vector<2x16xf32>
    %c0_155 = arith.constant 0 : index
    %c0_156 = arith.constant 0 : index
    %321 = vector.load %arg21[%c0_155, %c0_156] : memref<2x16xf32, #tpu.memory_space<vmem>>, vector<2x16xf32>
    tpu.vector_store %arg21[%c0_155, %c0_156], %320 {strides = array<i32>} : memref<2x16xf32, #tpu.memory_space<vmem>>, vector<2x16xf32>,
    return
  }
}

</mosaic_0001>

<bundles_post_ra>
// kernel: text_encoder_forward.1
= control target key start
LH: loop header
LB: loop body
LE: loop exit
PB: predicated region body
PF: predicated region fallthrough
CT: control target
= control target key end

     0   :  { %s3110_s0 = inlined_call_operand.vmem [shape: f32[16,32], index: 0, kind: input, shape index: {}]   ;;  %s3111_s1 = inlined_call_operand.vmem [shape: f32[16,16], index: 1, kind: input, shape index: {}]   ;;  %s3112_s2 = inlined_call_operand.vmem [shape: f32[2,16], index: 2, kind: input, shape index: {}]   ;;  %s3113_s3 = inlined_call_operand.vmem [shape: f32[1,32], index: 3, kind: input, shape index: {}]   ;;  %s3114_s4 = inlined_call_operand.vmem [shape: f32[1,32], index: 4, kind: input, shape index: {}]   ;;  %s3115_s5 = inlined_call_operand.vmem [shape: f32[2,32,96], index: 5, kind: input, shape index: {}]   ;;  %s3116_s6 = inlined_call_operand.vmem [shape: f32[2,1,96], index: 6, kind: input, shape index: {}]   ;;  %s3117_s7 = inlined_call_operand.vmem [shape: f32[2,32,32], index: 7, kind: input, shape index: {}]   ;;  %s3118_s8 = inlined_call_operand.vmem [shape: f32[2,1,32], index: 8, kind: input, shape index: {}]   ;;  %s3119_s9 = inlined_call_operand.vmem [shape: f32[2,1,32], index: 9, kind: input, shape index: {}]   ;;  %s3120_s10 = inlined_call_operand.vmem [shape: f32[2,1,32], index: 10, kind: input, shape index: {}]   ;;  %s3121_s11 = inlined_call_operand.vmem [shape: f32[2,32,64], index: 11, kind: input, shape index: {}]   ;;  %s3122_s12 = inlined_call_operand.vmem [shape: f32[2,1,64], index: 12, kind: input, shape index: {}]   ;;  %s3123_s13 = inlined_call_operand.vmem [shape: f32[2,64,32], index: 13, kind: input, shape index: {}]   ;;  %s3124_s14 = inlined_call_operand.vmem [shape: f32[2,1,32], index: 14, kind: input, shape index: {}]   ;;  %s3125_s15 = inlined_call_operand.vmem [shape: f32[2,1,32], index: 15, kind: input, shape index: {}]   ;;  %s3126_s16 = inlined_call_operand.vmem [shape: f32[2,1,32], index: 16, kind: input, shape index: {}]   ;;  %s3127_s17 = inlined_call_operand.vmem [shape: f32[32,16], index: 17, kind: input, shape index: {}]   ;;  %s3128_s18 = inlined_call_operand.vmem [shape: f32[1,16], index: 18, kind: input, shape index: {}]   ;;  %s3129_s19 = inlined_call_operand.vmem [shape: f32[1,16], index: 19, kind: input, shape index: {}]   ;;  %s3130_s20 = inlined_call_operand.vmem [shape: f32[1,16], index: 20, kind: input, shape index: {}]   ;;  %s3131_s21 = inlined_call_operand.hbm [shape: f32[2,16], index: 21, kind: output, shape index: {}]  }
   0x1   :  { %3135 = sst [smem:[#allocation5_spill]] %s3110_s0 }
   0x2   :  { %3136 = sst [smem:[#allocation6_spill]] %s3111_s1 }
   0x3   :  { %3137 = sst [smem:[#allocation7_spill]] %s3112_s2 }
   0x4   :  { %3138 = sst [smem:[#allocation8_spill]] %s3113_s3 }
   0x5   :  { %3139 = sst [smem:[#allocation9_spill]] %s3114_s4 }
   0x6   :  { %3140 = sst [smem:[#allocation10_spill]] %s3115_s5 }
   0x7   :  { %s3141_s26 = sld [smem:[#allocation5_spill]]  ;;  %vm75_vm0 = vcmask 261120  }
   0xd   :  { %v71_v0 = vld [vmem:[%s3141_s26] sm:$0xff]  ;;  %v72_v1 = vld [vmem:[%s3141_s26 + $0x8] sm:$0xff] }
   0xe   :  { %26 = vsyncpa [#allocation3], 0  ;;  %v76_v2 = vsel %vm75_vm0, %v71_v0, 0.0  ;;  %v79_v3 = vsel %vm75_vm0, %v72_v1, 0.0  ;;  %s3142_s0 = sld [smem:[#allocation10_spill]]  ;;  %vm217_vm1 = vcmask 130048  }
   0xf   :  { %77 = vadd.xlane.f32.xlu0 %v76_v2  ;;  %s3143_s25 = sld [smem:[#allocation8_spill]]  ;;  %v2135_v34 = vld [vmem:[%s3116_s6] ss:$0 sm:$0xff]  ;;  %s2591_s4 = smov 96   ;;  %vm891_vm2 = vcmask 523264   ;;  %vm2598_vm3 = vmmov 0  }
  0x10   :  { %s3144_s3 = sld [smem:[#allocation9_spill]]  ;;  %s2592_s30 = smov 112   ;;  %vm2089_vm4 = vcmask 123904  }
  0x11   :  { %s2593_s5 = smov 80   ;;  %s3145_s1 = sld [smem:[#allocation6_spill]] }
  0x12   :  { %s2595_s26 = smov 48   ;;  %s2596_s2 = smov 16  }
  0x13   :  { %80 = vadd.xlane.f32.xlu0 %v79_v3 }
  0x14   :  { %v122_v14 = vld [vmem:[%s3142_s0 + $0x18] sm:$0xff]  ;;  %v121_v15 = vld [vmem:[%s3142_s0 + $0x10] sm:$0xff]  ;;  %v120_v16 = vld [vmem:[%s3142_s0 + $0x8] sm:$0xff] }
  0x15   :  { %2320 = vmatprep.subr.mxu0 %v122_v14  ;;  %v119_v17 = vld [vmem:[%s3142_s0] sm:$0xff] }
  0x16   :  { %2321 = vmatpush3.msra.mxu0 %v122_v14  ;;  %v2133_v25 = vld [vmem:[%s3143_s25] ss:$0 sm:$0xff]  ;;  %s2594_s25 = smov 64  }
  0x17   :  { %2322 = vmatprep.subr.mxu0 %v121_v15  ;;  %v2134_v27 = vld [vmem:[%s3144_s3] ss:$0 sm:$0xff]  ;;  %v2782_v46 = vld [vmem:[%s3145_s1 + $0x8] sm:$0xff] }
  0x18   :  { %2323 = vmatpush3.msra.mxu0 %v121_v15  ;;  %v2787_v49 = vld [vmem:[%s3145_s1] sm:$0xff] }
  0x19   :  { %2324 = vmatprep.subr.mxu0 %v120_v16 }
  0x1a   :  { %2325 = vmatpush3.msra.mxu0 %v120_v16 }
  0x1b   :  { %2326 = vmatprep.subr.mxu0 %v119_v17 }
  0x1c   :  { %2327 = vmatpush3.msra.mxu0 %v119_v17 }
  0x98   :  { %v78_v4 = vpop.xlane.xlu0 %77 }
  0x99   :  { %v83_v5 = vmul.f32 0.03125, %v78_v4 }
  0x9b   :  { %v85_v6 = vsub.f32 %v71_v0, %v83_v5 }
  0x9c   :  { %v81_v7 = vpop.xlane.xlu0 %80 }
  0x9d   :  { %v84_v8 = vmul.f32 0.03125, %v81_v7  ;;  %v87_v9 = vmul.f32 %v85_v6, %v85_v6 }
  0x9f   :  { %v86_v10 = vsub.f32 %v72_v1, %v84_v8  ;;  %v89_v11 = vsel %vm75_vm0, %v87_v9, 0.0 }
  0xa0   :  { %90 = vadd.xlane.f32.xlu1 %v89_v11 }
  0xa1   :  { %v88_v12 = vmul.f32 %v86_v10, %v86_v10 }
  0xa3   :  { %v92_v13 = vsel %vm75_vm0, %v88_v12, 0.0 }
  0xa4   :  { %93 = vadd.xlane.f32.xlu1 %v92_v13 }
 0x129   :  { %v91_v18 = vpop.xlane.xlu1 %90 }
 0x12a   :  { %v95_v19 = vmul.f32 0.03125, %v91_v18 }
 0x12c   :  { %v97_v20 = vadd.f32 1e-12, %v95_v19 }
 0x12d   :  { %v94_v21 = vpop.xlane.xlu1 %93 }
 0x12e   :  { %2507 = vrsqrt.f32 %v97_v20  ;;  %v96_v22 = vmul.f32 0.03125, %v94_v21 }
 0x130   :  { %v98_v23 = vadd.f32 1e-12, %v96_v22 }
 0x132   :  { %2509 = vrsqrt.f32 %v98_v23 }
 0x13b   :  { %v2508_v24 = vpop.eup %2507 }
 0x13c   :  { %v101_v26 = vmul.f32 %v2508_v24, %v85_v6 }
 0x13e   :  { %v109_v28 = vmul.f32 %v2133_v25, %v101_v26 }
 0x13f   :  { %v2510_v29 = vpop.eup %2509 }
 0x140   :  { %v102_v30 = vmul.f32 %v2510_v29, %v86_v10  ;;  %v2738_v31 = vadd.f32 %v2134_v27, %v109_v28 }
 0x142   :  { %v110_v32 = vmul.f32 %v2133_v25, %v102_v30  ;;  %2328 = vmatprep.mubr.msk.f32.mxu0 %vm75_vm0, %v2738_v31 }
 0x144   :  { %v2742_v33 = vadd.f32 %v2134_v27, %v110_v32 }
 0x146   :  { %2329 = vmatmul.mubr.msk.f32.vlgmr.msra.gmra.mxu0 %vm75_vm0, %v2742_v33 }
 0x206   :  { %v2330_v35 = vpop.f32.mrf.mxu0 }
 0x207   :  { %v2749_v36 = vadd.f32 %v2330_v35, %v2135_v34 }
 0x208   :  { %v202_v37 = vpop.f32.mrf.mxu0 }
 0x209   :  { %v2751_v38 = vadd.f32 %v2135_v34, %v202_v37  ;;  %215 = vrot.lane.b32.xlu0 %v2749_v36, %s2591_s4  ;;  %v631_v37 = vld [vmem:[%s3117_s7 + $0x18] sm:$0xff] }
 0x20b   :  { %213 = vrot.lane.b32.xlu1 %v2751_v38, %s2591_s4  ;;  %2335 = vmatprep.mubr.msk.f32.mxu1 %vm217_vm1, %v2751_v38 }
 0x20d   :  { %414 = vrot.lane.b32.xlu0 %v2751_v38, %s2592_s30 }
 0x20f   :  { %420 = vrot.lane.b32.xlu1 %v2749_v36, %s2593_s5 }
 0x213   :  { %418 = vrot.lane.b32.xlu1 %v2751_v38, %s2593_s5 }
 0x217   :  { %416 = vrot.lane.b32.xlu1 %v2749_v36, %s2592_s30 }
 0x27b   :  { %v216_v39 = vpop.permute.xlu0 %215 }
 0x27c   :  { %2331 = vmatprep.subr.msk.mxu1 %vm217_vm1, %v216_v39 }
 0x27d   :  { %2332 = vmatpush3.xpose.msk.msra.mxu1 %vm217_vm1, %v216_v39  ;;  %v214_v40 = vpop.permute.xlu1 %213  ;;  %v629_v39 = vld [vmem:[%s3117_s7 + $0x8] sm:$0xff] }
 0x27e   :  { %2333 = vmatprep.subr.msk.mxu1 %vm217_vm1, %v214_v40 }
 0x27f   :  { %v415_v42 = vpop.permute.xlu0 %414 }
 0x281   :  { %2334 = vmatpush3.xpose.msk.msra.mxu1 %vm217_vm1, %v214_v40  ;;  %v421_v41 = vpop.permute.xlu1 %420  ;;  %v628_v40 = vld [vmem:[%s3117_s7] sm:$0xff] }
 0x282   :  { %2345 = vmatprep.subr.msk.mxu1 %vm217_vm1, %v421_v41 }
 0x284   :  { %2336 = vmatmul.mubr.msk.f32.vlgmr.msra.gmra.mxu1 %vm217_vm1, %v2749_v36 }
 0x285   :  { %v419_v43 = vpop.permute.xlu1 %418  ;;  %2346 = vmatpush3.xpose.msk.msra.mxu1 %vm217_vm1, %v421_v41  ;;  %2349 = vmatprep.mubr.msk.f32.mxu1 %vm217_vm1, %v415_v42 }
 0x286   :  { %2347 = vmatprep.subr.msk.mxu1 %vm217_vm1, %v419_v43 }
 0x289   :  { %2348 = vmatpush3.xpose.msk.msra.mxu1 %vm217_vm1, %v419_v43  ;;  %v417_v44 = vpop.permute.xlu1 %416 }
 0x28c   :  { %2350 = vmatmul.mubr.msk.f32.vlgmr.msra.gmra.mxu1 %vm217_vm1, %v417_v44 }
 0x344   :  { %v2337_v45 = vpop.f32.mrf.mxu1 }
 0x345   :  { %v302_v47 = vmul.f32 0.25, %v2337_v45 }
 0x346   :  { %v292_v48 = vpop.f32.mrf.mxu1 }
 0x347   :  { %v301_v50 = vmul.f32 0.25, %v292_v48  ;;  %v304_v51 = vadd.f32 %v302_v47, %v2782_v46 }
 0x349   :  { %v308_v52 = vsel %vm217_vm1, %v304_v51, -inf  ;;  %v303_v53 = vadd.f32 %v301_v50, %v2787_v49 }
 0x34a   :  { %309 = vmax.xlane.f32.xlu1 %v308_v52 }
 0x34b   :  { %v305_v54 = vsel %vm217_vm1, %v303_v53, -inf }
 0x34c   :  { %v2351_v55 = vpop.f32.mrf.mxu1  ;;  %306 = vmax.xlane.f32.xlu0 %v305_v54 }
 0x34d   :  { %v506_v57 = vmul.f32 0.25, %v2351_v55 }
 0x34e   :  { %v496_v56 = vpop.f32.mrf.mxu1 }
 0x34f   :  { %v505_v58 = vmul.f32 0.25, %v496_v56  ;;  %v508_v61 = vadd.f32 %v506_v57, %v2782_v46 }
 0x351   :  { %v507_v59 = vadd.f32 %v505_v58, %v2787_v49  ;;  %v512_v62 = vsel %vm217_vm1, %v508_v61, -inf }
 0x353   :  { %v509_v60 = vsel %vm217_vm1, %v507_v59, -inf }
 0x354   :  { %510 = vmax.xlane.f32.xlu0 %v509_v60 }
 0x358   :  { %513 = vmax.xlane.f32.xlu0 %v512_v62 }
 0x3d3   :  { %v310_v63 = vpop.xlane.xlu1 %309 }
 0x3d4   :  { %v312_v0 = vsub.f32 %v304_v51, %v310_v63  ;;  %v2150_v51 = vld [vmem:[%s3118_s8] ss:$0 sm:$0xff] }
 0x3d5   :  { %v307_v1 = vpop.xlane.xlu0 %306 }
 0x3d6   :  { %v315_v2 = vmul.f32 1.442695, %v312_v0  ;;  %v311_v3 = vsub.f32 %v303_v53, %v307_v1 }
 0x3d8   :  { %2511 = vpow2.f32 %v315_v2  ;;  %v313_v4 = vmul.f32 1.442695, %v311_v3 }
 0x3da   :  { %2513 = vpow2.f32 %v313_v4 }
 0x3dd   :  { %v511_v5 = vpop.xlane.xlu0 %510 }
 0x3de   :  { %v515_v6 = vsub.f32 %v507_v59, %v511_v5  ;;  %v768_v5 = vld [vmem:[%s3121_s11 + $0x10] sm:$0xff] }
 0x3e0   :  { %v517_v7 = vmul.f32 1.442695, %v515_v6  ;;  %v767_v6 = vld [vmem:[%s3121_s11 + $0x8] sm:$0xff] }
 0x3e1   :  { %v514_v8 = vpop.xlane.xlu0 %513 }
 0x3e2   :  { %2515 = vpow2.f32 %v517_v7  ;;  %v516_v9 = vsub.f32 %v508_v61, %v514_v8  ;;  %v766_v7 = vld [vmem:[%s3121_s11] sm:$0xff] }
 0x3e4   :  { %v519_v10 = vmul.f32 1.442695, %v516_v9 }
 0x3e5   :  { %v2512_v11 = vpop.eup %2511 }
 0x3e6   :  { %2517 = vpow2.f32 %v519_v10  ;;  %v320_v12 = vsel %vm217_vm1, %v2512_v11, 0.0 }
 0x3e7   :  { %v2514_v13 = vpop.eup %2513  ;;  %321 = vadd.xlane.f32.xlu1 %v320_v12 }
 0x3e8   :  { %v317_v14 = vsel %vm217_vm1, %v2514_v13, 0.0 }
 0x3e9   :  { %318 = vadd.xlane.f32.xlu0 %v317_v14 }
 0x3ef   :  { %v2516_v15 = vpop.eup %2515 }
 0x3f0   :  { %v521_v16 = vsel %vm217_vm1, %v2516_v15, 0.0 }
 0x3f1   :  { %522 = vadd.xlane.f32.xlu0 %v521_v16 }
 0x3f3   :  { %v2518_v17 = vpop.eup %2517 }
 0x3f4   :  { %v524_v18 = vsel %vm217_vm1, %v2518_v17, 0.0 }
 0x3f5   :  { %525 = vadd.xlane.f32.xlu1 %v524_v18 }
 0x406   :  { %327 = vrot.lane.b32.xlu1 %v2751_v38, %s2594_s25 }
 0x407   :  { %329 = vrot.lane.b32.xlu0 %v2749_v36, %s2594_s25 }
 0x40a   :  { %533 = vrot.lane.b32.xlu1 %v2749_v36, %s2595_s26 }
 0x40e   :  { %531 = vrot.lane.b32.xlu1 %v2751_v38, %s2595_s26  ;;  %v630_v38 = vld [vmem:[%s3117_s7 + $0x10] sm:$0xff] }
 0x470   :  { %v322_v19 = vpop.xlane.xlu1 %321 }
 0x471   :  { %2519 = vrcp.f32 %v322_v19 }
 0x472   :  { %v319_v20 = vpop.xlane.xlu0 %318 }
 0x473   :  { %2521 = vrcp.f32 %v319_v20 }
 0x47a   :  { %v523_v21 = vpop.xlane.xlu0 %522 }
 0x47b   :  { %2523 = vrcp.f32 %v523_v21 }
 0x47e   :  { %v526_v22 = vpop.xlane.xlu1 %525  ;;  %v330_v23 = vpop.permute.xlu0 %329 }
 0x47f   :  { %v2520_v24 = vpop.eup %2519  ;;  %2525 = vrcp.f32 %v526_v22  ;;  %2338 = vmatprep.subr.mxu0 %v330_v23 }
 0x480   :  { %v2522_v25 = vpop.eup %2521  ;;  %2339 = vmatpush3.msra.mxu0 %v330_v23  ;;  %v326_v28 = vmul.f32 %v2520_v24, %v2512_v11  ;;  %v883_v24 = vld [vmem:[%s3123_s13 + $0x38] sm:$0xff] }
 0x481   :  { %v325_v26 = vmul.f32 %v2522_v25, %v2514_v13  ;;  %v882_v25 = vld [vmem:[%s3123_s13 + $0x30] sm:$0xff] }
 0x482   :  { %v328_v27 = vpop.permute.xlu1 %327 }
 0x483   :  { %2340 = vmatprep.subr.mxu0 %v328_v27  ;;  %2342 = vmatprep.mubr.msk.f32.mxu0 %vm217_vm1, %v325_v26  ;;  %v881_v26 = vld [vmem:[%s3123_s13 + $0x28] sm:$0xff] }
 0x484   :  { %2341 = vmatpush3.msra.mxu0 %v328_v27  ;;  %v880_v27 = vld [vmem:[%s3123_s13 + $0x20] sm:$0xff] }
 0x485   :  { %2343 = vmatmul.mubr.msk.f32.vlgmr.msra.gmra.mxu0 %vm217_vm1, %v326_v28  ;;  %v879_v28 = vld [vmem:[%s3123_s13 + $0x18] sm:$0xff] }
 0x486   :  { %v534_v29 = vpop.permute.xlu1 %533 }
 0x487   :  { %2352 = vmatprep.subr.mxu0 %v534_v29 }
 0x488   :  { %v2524_v30 = vpop.eup %2523  ;;  %2353 = vmatpush3.msra.mxu0 %v534_v29  ;;  %v878_v29 = vld [vmem:[%s3123_s13 + $0x10] sm:$0xff] }
 0x489   :  { %v529_v32 = vmul.f32 %v2524_v30, %v2516_v15  ;;  %v2153_v15 = vld [vmem:[%s3119_s9] ss:$0 sm:$0xff]  ;;  %v877_v30 = vld [vmem:[%s3123_s13 + $0x8] sm:$0xff] }
 0x48a   :  { %v532_v34 = vpop.permute.xlu1 %531 }
 0x48b   :  { %2354 = vmatprep.subr.mxu0 %v532_v34  ;;  %2356 = vmatprep.mubr.msk.f32.mxu0 %vm217_vm1, %v529_v32  ;;  %v876_v32 = vld [vmem:[%s3123_s13] sm:$0xff] }
 0x48c   :  { %v2526_v35 = vpop.eup %2525  ;;  %2355 = vmatpush3.msra.mxu0 %v532_v34  ;;  %v2155_v34 = vld [vmem:[%s3122_s12] ss:$0 sm:$0xff] }
 0x48d   :  { %v530_v36 = vmul.f32 %v2526_v35, %v2518_v17  ;;  %2359 = vmatprep.subr.mxu0 %v631_v37  ;;  %v2154_v17 = vld [vmem:[%s3120_s10] ss:$0 sm:$0xff] }
 0x48f   :  { %2357 = vmatmul.mubr.msk.f32.vlgmr.msra.gmra.mxu0 %vm217_vm1, %v530_v36 }
 0x490   :  { %2360 = vmatpush3.msra.mxu0 %v631_v37 }
 0x491   :  { %2361 = vmatprep.subr.mxu0 %v630_v38 }
 0x492   :  { %2362 = vmatpush3.msra.mxu0 %v630_v38 }
 0x493   :  { %2363 = vmatprep.subr.mxu0 %v629_v39 }
 0x494   :  { %2364 = vmatpush3.msra.mxu0 %v629_v39 }
 0x495   :  { %2365 = vmatprep.subr.mxu0 %v628_v40 }
 0x496   :  { %2366 = vmatpush3.msra.mxu0 %v628_v40 }
 0x497   :  { %2381 = vmatprep.subr.mxu0 %v883_v24 }
 0x545   :  { %v2344_v41 = vpop.f32.mrf.mxu0 }
 0x547   :  { %v405_v42 = vpop.f32.mrf.mxu0 }
 0x54f   :  { %v2358_v43 = vpop.f32.mrf.mxu0 }
 0x550   :  { %622 = vrot.lane.b32.xlu1 %v2358_v43, %s2596_s2 }
 0x551   :  { %v609_v44 = vpop.f32.mrf.mxu0 }
 0x552   :  { %620 = vrot.lane.b32.xlu0 %v609_v44, %s2596_s2 }
 0x5c2   :  { %v623_v45 = vpop.permute.xlu1 %622 }
 0x5c3   :  { %v627_v50 = vsel %vm217_vm1, %v2344_v41, %v623_v45 }
 0x5c4   :  { %v621_v47 = vpop.permute.xlu0 %620 }
 0x5c5   :  { %v626_v48 = vsel %vm217_vm1, %v405_v42, %v621_v47 }
 0x5c6   :  { %2367 = vmatprep.mubr.msk.f32.mxu0 %vm75_vm0, %v626_v48 }
 0x5c7   :  { %2368 = vmatmul.mubr.msk.f32.vlgmr.msra.gmra.mxu0 %vm75_vm0, %v627_v50 }
 0x5c8   :  { %2382 = vmatpush3.msra.mxu0 %v883_v24 }
 0x5c9   :  { %2383 = vmatprep.subr.mxu0 %v882_v25 }
 0x5ca   :  { %2384 = vmatpush3.msra.mxu0 %v882_v25 }
 0x5cb   :  { %2385 = vmatprep.subr.mxu0 %v881_v26 }
 0x5cc   :  { %2386 = vmatpush3.msra.mxu0 %v881_v26 }
 0x5cd   :  { %2387 = vmatprep.subr.mxu0 %v880_v27 }
 0x5ce   :  { %2388 = vmatpush3.msra.mxu0 %v880_v27 }
 0x5cf   :  { %2389 = vmatprep.subr.mxu0 %v879_v28 }
 0x5d0   :  { %2390 = vmatpush3.msra.mxu0 %v879_v28  ;;  %v2162_v28 = vld [vmem:[%s3126_s16] ss:$0 sm:$0xff] }
 0x5d1   :  { %2391 = vmatprep.subr.mxu0 %v878_v29 }
 0x5d2   :  { %2392 = vmatpush3.msra.mxu0 %v878_v29 }
 0x5d3   :  { %2393 = vmatprep.subr.mxu0 %v877_v30 }
 0x5d4   :  { %2394 = vmatpush3.msra.mxu0 %v877_v30 }
 0x5d5   :  { %2395 = vmatprep.subr.mxu0 %v876_v32 }
 0x5d6   :  { %2396 = vmatpush3.msra.mxu0 %v876_v32 }
 0x687   :  { %v2369_v52 = vpop.f32.mrf.mxu0 }
 0x688   :  { %v717_v53 = vadd.f32 %v2369_v52, %v2150_v51 }
 0x689   :  { %v711_v54 = vpop.f32.mrf.mxu0 }
 0x68a   :  { %v712_v55 = vadd.f32 %v2150_v51, %v711_v54  ;;  %v721_v56 = vadd.f32 %v717_v53, %v2742_v33 }
 0x68c   :  { %v727_v57 = vsel %vm75_vm0, %v721_v56, 0.0  ;;  %v720_v58 = vadd.f32 %v712_v55, %v2738_v31  ;;  %v769_v31 = vld [vmem:[%s3121_s11 + $0x18] sm:$0xff] }
 0x68d   :  { %728 = vadd.xlane.f32.xlu1 %v727_v57  ;;  %2370 = vmatprep.subr.mxu1 %v769_v31 }
 0x68e   :  { %v724_v59 = vsel %vm75_vm0, %v720_v58, 0.0  ;;  %2371 = vmatpush3.msra.mxu1 %v769_v31 }
 0x68f   :  { %725 = vadd.xlane.f32.xlu0 %v724_v59  ;;  %2372 = vmatprep.subr.mxu1 %v768_v5  ;;  %v2158_v59 = vld [vmem:[%s3124_s14] ss:$0 sm:$0xff] }
 0x690   :  { %2373 = vmatpush3.msra.mxu1 %v768_v5 }
 0x691   :  { %2374 = vmatprep.subr.mxu1 %v767_v6 }
 0x692   :  { %2375 = vmatpush3.msra.mxu1 %v767_v6 }
 0x693   :  { %2376 = vmatprep.subr.mxu1 %v766_v7 }
 0x694   :  { %2377 = vmatpush3.msra.mxu1 %v766_v7 }
 0x716   :  { %v729_v60 = vpop.xlane.xlu1 %728 }
 0x717   :  { %v731_v61 = vmul.f32 0.03125, %v729_v60 }
 0x718   :  { %v726_v62 = vpop.xlane.xlu0 %725 }
 0x719   :  { %v730_v63 = vmul.f32 0.03125, %v726_v62  ;;  %v733_v0 = vsub.f32 %v721_v56, %v731_v61 }
 0x71b   :  { %v732_v1 = vsub.f32 %v720_v58, %v730_v63  ;;  %v735_v4 = vmul.f32 %v733_v0, %v733_v0 }
 0x71d   :  { %v734_v2 = vmul.f32 %v732_v1, %v732_v1  ;;  %v739_v33 = vsel %vm75_vm0, %v735_v4, 0.0 }
 0x71f   :  { %v736_v3 = vsel %vm75_vm0, %v734_v2, 0.0 }
 0x720   :  { %737 = vadd.xlane.f32.xlu0 %v736_v3 }
 0x724   :  { %740 = vadd.xlane.f32.xlu0 %v739_v33 }
 0x7a9   :  { %v738_v8 = vpop.xlane.xlu0 %737 }
 0x7aa   :  { %v742_v9 = vmul.f32 0.03125, %v738_v8 }
 0x7ac   :  { %v744_v10 = vadd.f32 1e-12, %v742_v9 }
 0x7ad   :  { %v741_v11 = vpop.xlane.xlu0 %740 }
 0x7ae   :  { %2527 = vrsqrt.f32 %v744_v10  ;;  %v743_v12 = vmul.f32 0.03125, %v741_v11 }
 0x7b0   :  { %v745_v13 = vadd.f32 1e-12, %v743_v12  ;;  %v2166_v12 = vld [vmem:[%s3142_s0 + $0x38] sm:$0xff] }
 0x7b1   :  { %2400 = vmatprep.subr.mxu1 %v2166_v12 }
 0x7b2   :  { %2529 = vrsqrt.f32 %v745_v13  ;;  %v2165_v13 = vld [vmem:[%s3142_s0 + $0x30] sm:$0xff] }
 0x7bb   :  { %v2528_v14 = vpop.eup %2527 }
 0x7bc   :  { %v748_v16 = vmul.f32 %v2528_v14, %v732_v1  ;;  %v2164_v14 = vld [vmem:[%s3142_s0 + $0x28] sm:$0xff] }
 0x7be   :  { %v756_v18 = vmul.f32 %v2153_v15, %v748_v16 }
 0x7bf   :  { %v2530_v19 = vpop.eup %2529 }
 0x7c0   :  { %v749_v20 = vmul.f32 %v2530_v19, %v733_v0  ;;  %v2858_v21 = vadd.f32 %v2154_v17, %v756_v18 }
 0x7c2   :  { %v757_v22 = vmul.f32 %v2153_v15, %v749_v20  ;;  %2378 = vmatprep.mubr.msk.f32.mxu1 %vm75_vm0, %v2858_v21  ;;  %v2163_v15 = vld [vmem:[%s3142_s0 + $0x20] sm:$0xff]  ;;  %s2599_s0 = smov [#allocation2]  }
 0x7c3   :  { %s2125_s22 = sshll.u32 %s2599_s0, 4  ;;  %s2126_s22 = int_to_ptr.vmem [resolvable:$true] %s2125_s22 }
 0x7c4   :  { %v765_v23 = vadd.f32 %v2154_v17, %v757_v22  ;;  %s2569_s23 = scalar_lea.vmem %s2126_s22, 32  ;;  %p2574_p1 = scmp.lt.s32.totalorder %s2126_s22, %s2126_s22 }
 0x7c5   :  { %p2570_p0 = scmp.ne.s32.totalorder %s2126_s22, %s2569_s23  ;;  %p2575_p2 = scmp.lt.s32.totalorder %s2569_s23, %s2569_s23 }
 0x7c6   :  { %2379 = vmatmul.mubr.msk.f32.vlgmr.msra.gmra.mxu1 %vm75_vm0, %v765_v23 }
 0x7c7   :  { %2401 = vmatpush3.msra.mxu1 %v2166_v12  ;;  %p2576_p3 = por %p2575_p2, %p2574_p1 }
 0x7c8   :  { %2402 = vmatprep.subr.mxu1 %v2165_v13 }
 0x7c9   :  { %2403 = vmatpush3.msra.mxu1 %v2165_v13  ;;  %p2577_p4 = pnand %p2576_p3, %p2570_p0 }
 0x7ca   :  { %2404 = vmatprep.subr.mxu1 %v2164_v14 }
 0x7cb   :  { %2405 = vmatpush3.msra.mxu1 %v2164_v14 }
 0x7cc   :  { %2406 = vmatprep.subr.mxu1 %v2163_v15 }
 0x7cd   :  { %2407 = vmatpush3.msra.mxu1 %v2163_v15 }
 0x886   :  { %v2380_v35 = vpop.f32.mrf.mxu1 }
 0x887   :  { %v855_v36 = vadd.f32 %v2380_v35, %v2155_v34 }
 0x888   :  { %v849_v37 = vpop.f32.mrf.mxu1 }
 0x889   :  { %v859_v38 = vmul.f32 %v855_v36, %v855_v36  ;;  %v850_v39 = vadd.f32 %v2155_v34, %v849_v37  ;;  %v2168_v34 = vld [vmem:[%s3116_s6 + $0x1] ss:$0 sm:$0xff] }
 0x88b   :  { %v861_v40 = vmul.f32 %v859_v38, %v855_v36  ;;  %v858_v41 = vmul.f32 %v850_v39, %v850_v39 }
 0x88d   :  { %v863_v42 = vmul.f32 0.044715, %v861_v40  ;;  %v860_v43 = vmul.f32 %v858_v41, %v850_v39 }
 0x88f   :  { %v865_v44 = vadd.f32 %v863_v42, %v855_v36  ;;  %v862_v45 = vmul.f32 0.044715, %v860_v43 }
 0x891   :  { %v867_v47 = vmul.f32 0.7978846, %v865_v44  ;;  %v864_v48 = vadd.f32 %v862_v45, %v850_v39 }
 0x893   :  { %2531 = vtanh.f32 %v867_v47  ;;  %v866_v50 = vmul.f32 0.7978846, %v864_v48 }
 0x895   :  { %2533 = vtanh.f32 %v866_v50 }
 0x8a0   :  { %v2532_v51 = vpop.eup %2531 }
 0x8a1   :  { %v871_v52 = vadd.f32 1.0, %v2532_v51 }
 0x8a2   :  { %v2534_v53 = vpop.eup %2533 }
 0x8a3   :  { %v870_v54 = vadd.f32 1.0, %v2534_v53  ;;  %v873_v55 = vmul.f32 0.5, %v871_v52 }
 0x8a5   :  { %v872_v56 = vmul.f32 0.5, %v870_v54  ;;  %v875_v58 = vmul.f32 %v873_v55, %v855_v36 }
 0x8a7   :  { %v874_v57 = vmul.f32 %v872_v56, %v850_v39 }
 0x8a9   :  { %2397 = vmatprep.mubr.msk.f32.mxu0 %vm891_vm2, %v874_v57 }
 0x8aa   :  { %2398 = vmatmul.mubr.msk.f32.vlgmr.msra.gmra.mxu0 %vm891_vm2, %v875_v58 }
 0x96a   :  { %v2399_v60 = vpop.f32.mrf.mxu0 }
 0x96b   :  { %v970_v61 = vadd.f32 %v2399_v60, %v2158_v59 }
 0x96c   :  { %v964_v62 = vpop.f32.mrf.mxu0 }
 0x96d   :  { %v965_v63 = vadd.f32 %v2158_v59, %v964_v62  ;;  %v974_v0 = vadd.f32 %v970_v61, %v765_v23  ;;  %v2161_v23 = vld [vmem:[%s3125_s15] ss:$0 sm:$0xff] }
 0x96f   :  { %v980_v1 = vsel %vm75_vm0, %v974_v0, 0.0  ;;  %v973_v2 = vadd.f32 %v965_v63, %v2858_v21 }
 0x970   :  { %981 = vadd.xlane.f32.xlu1 %v980_v1 }
 0x971   :  { %v977_v3 = vsel %vm75_vm0, %v973_v2, 0.0 }
 0x972   :  { %978 = vadd.xlane.f32.xlu0 %v977_v3 }
 0x9f9   :  { %v982_v4 = vpop.xlane.xlu1 %981 }
 0x9fa   :  { %v984_v33 = vmul.f32 0.03125, %v982_v4 }
 0x9fb   :  { %v979_v31 = vpop.xlane.xlu0 %978 }
 0x9fc   :  { %v986_v5 = vsub.f32 %v974_v0, %v984_v33  ;;  %v983_v6 = vmul.f32 0.03125, %v979_v31 }
 0x9fe   :  { %v985_v7 = vsub.f32 %v973_v2, %v983_v6  ;;  %v988_v8 = vmul.f32 %v986_v5, %v986_v5 }
 0xa00   :  { %v992_v9 = vsel %vm75_vm0, %v988_v8, 0.0  ;;  %v987_v10 = vmul.f32 %v985_v7, %v985_v7 }
 0xa01   :  { %993 = vadd.xlane.f32.xlu1 %v992_v9 }
 0xa02   :  { %v989_v11 = vsel %vm75_vm0, %v987_v10, 0.0 }
 0xa03   :  { %990 = vadd.xlane.f32.xlu0 %v989_v11 }
 0xa8a   :  { %v994_v16 = vpop.xlane.xlu1 %993 }
 0xa8b   :  { %v996_v17 = vmul.f32 0.03125, %v994_v16 }
 0xa8c   :  { %v991_v18 = vpop.xlane.xlu0 %990 }
 0xa8d   :  { %v998_v19 = vadd.f32 1e-12, %v996_v17  ;;  %v995_v20 = vmul.f32 0.03125, %v991_v18 }
 0xa8f   :  { %2535 = vrsqrt.f32 %v998_v19  ;;  %v997_v21 = vadd.f32 1e-12, %v995_v20 }
 0xa91   :  { %2537 = vrsqrt.f32 %v997_v21 }
 0xa9c   :  { %v2536_v22 = vpop.eup %2535 }
 0xa9d   :  { %v1002_v24 = vmul.f32 %v2536_v22, %v986_v5 }
 0xa9e   :  { %v2538_v25 = vpop.eup %2537 }
 0xa9f   :  { %v1001_v26 = vmul.f32 %v2538_v25, %v985_v7  ;;  %v1010_v27 = vmul.f32 %v2161_v23, %v1002_v24 }
 0xaa1   :  { %v1009_v29 = vmul.f32 %v2161_v23, %v1001_v26  ;;  %v2920_v32 = vadd.f32 %v2162_v28, %v1010_v27 }
 0xaa3   :  { %v2918_v30 = vadd.f32 %v2162_v28, %v1009_v29 }
 0xaa5   :  { %2408 = vmatprep.mubr.msk.f32.mxu1 %vm75_vm0, %v2918_v30 }
 0xaa6   :  { %2409 = vmatmul.mubr.msk.f32.vlgmr.msra.gmra.mxu1 %vm75_vm0, %v2920_v32 }
 0xb66   :  { %v2410_v35 = vpop.f32.mrf.mxu1 }
 0xb67   :  { %v2929_v36 = vadd.f32 %v2410_v35, %v2168_v34  ;;  %v2186_v35 = vld [vmem:[%s3117_s7 + $0x38] sm:$0xff] }
 0xb68   :  { %v1104_v37 = vpop.f32.mrf.mxu1 }
 0xb69   :  { %v2931_v38 = vadd.f32 %v2168_v34, %v1104_v37  ;;  %1117 = vrot.lane.b32.xlu0 %v2929_v36, %s2591_s4  ;;  %v2184_v37 = vld [vmem:[%s3117_s7 + $0x28] sm:$0xff] }
 0xb6b   :  { %1115 = vrot.lane.b32.xlu1 %v2931_v38, %s2591_s4  ;;  %2415 = vmatprep.mubr.msk.f32.mxu1 %vm217_vm1, %v2931_v38 }
 0xb6d   :  { %1315 = vrot.lane.b32.xlu0 %v2931_v38, %s2592_s30 }
 0xb6f   :  { %1321 = vrot.lane.b32.xlu1 %v2929_v36, %s2593_s5 }
 0xb73   :  { %1319 = vrot.lane.b32.xlu1 %v2931_v38, %s2593_s5 }
 0xb77   :  { %1317 = vrot.lane.b32.xlu1 %v2929_v36, %s2592_s30 }
 0xbdb   :  { %v1118_v39 = vpop.permute.xlu0 %1117 }
 0xbdc   :  { %2411 = vmatprep.subr.msk.mxu1 %vm217_vm1, %v1118_v39 }
 0xbdd   :  { %2412 = vmatpush3.xpose.msk.msra.mxu1 %vm217_vm1, %v1118_v39  ;;  %v1116_v40 = vpop.permute.xlu1 %1115 }
 0xbde   :  { %2413 = vmatprep.subr.msk.mxu1 %vm217_vm1, %v1116_v40 }
 0xbdf   :  { %v1316_v42 = vpop.permute.xlu0 %1315 }
 0xbe1   :  { %2414 = vmatpush3.xpose.msk.msra.mxu1 %vm217_vm1, %v1116_v40  ;;  %v1322_v41 = vpop.permute.xlu1 %1321 }
 0xbe2   :  { %2425 = vmatprep.subr.msk.mxu1 %vm217_vm1, %v1322_v41 }
 0xbe4   :  { %2416 = vmatmul.mubr.msk.f32.vlgmr.msra.gmra.mxu1 %vm217_vm1, %v2929_v36 }
 0xbe5   :  { %v1320_v43 = vpop.permute.xlu1 %1319  ;;  %2426 = vmatpush3.xpose.msk.msra.mxu1 %vm217_vm1, %v1322_v41  ;;  %2429 = vmatprep.mubr.msk.f32.mxu1 %vm217_vm1, %v1316_v42 }
 0xbe6   :  { %2427 = vmatprep.subr.msk.mxu1 %vm217_vm1, %v1320_v43 }
 0xbe9   :  { %2428 = vmatpush3.xpose.msk.msra.mxu1 %vm217_vm1, %v1320_v43  ;;  %v1318_v44 = vpop.permute.xlu1 %1317 }
 0xbec   :  { %2430 = vmatmul.mubr.msk.f32.vlgmr.msra.gmra.mxu1 %vm217_vm1, %v1318_v44 }
 0xca4   :  { %v2417_v45 = vpop.f32.mrf.mxu1 }
 0xca5   :  { %v1203_v47 = vmul.f32 0.25, %v2417_v45 }
 0xca6   :  { %v1193_v48 = vpop.f32.mrf.mxu1 }
 0xca7   :  { %v1202_v50 = vmul.f32 0.25, %v1193_v48  ;;  %v1205_v51 = vadd.f32 %v1203_v47, %v2782_v46  ;;  %v2188_v48 = vld [vmem:[%s3118_s8 + $0x1] ss:$0 sm:$0xff] }
 0xca9   :  { %v1209_v52 = vsel %vm217_vm1, %v1205_v51, -inf  ;;  %v1204_v53 = vadd.f32 %v1202_v50, %v2787_v49 }
 0xcaa   :  { %1210 = vmax.xlane.f32.xlu1 %v1209_v52 }
 0xcab   :  { %v1206_v54 = vsel %vm217_vm1, %v1204_v53, -inf }
 0xcac   :  { %v2431_v55 = vpop.f32.mrf.mxu1  ;;  %1207 = vmax.xlane.f32.xlu0 %v1206_v54 }
 0xcad   :  { %v1407_v57 = vmul.f32 0.25, %v2431_v55 }
 0xcae   :  { %v1397_v56 = vpop.f32.mrf.mxu1 }
 0xcaf   :  { %v1406_v58 = vmul.f32 0.25, %v1397_v56  ;;  %v1409_v61 = vadd.f32 %v1407_v57, %v2782_v46 }
 0xcb1   :  { %v1408_v59 = vadd.f32 %v1406_v58, %v2787_v49  ;;  %v1413_v62 = vsel %vm217_vm1, %v1409_v61, -inf }
 0xcb3   :  { %v1410_v60 = vsel %vm217_vm1, %v1408_v59, -inf }
 0xcb4   :  { %1411 = vmax.xlane.f32.xlu0 %v1410_v60 }
 0xcb8   :  { %1414 = vmax.xlane.f32.xlu0 %v1413_v62 }
 0xd33   :  { %v1211_v63 = vpop.xlane.xlu1 %1210 }
 0xd34   :  { %v1213_v0 = vsub.f32 %v1205_v51, %v1211_v63 }
 0xd35   :  { %v1208_v1 = vpop.xlane.xlu0 %1207 }
 0xd36   :  { %v1216_v2 = vmul.f32 1.442695, %v1213_v0  ;;  %v1212_v3 = vsub.f32 %v1204_v53, %v1208_v1 }
 0xd38   :  { %2539 = vpow2.f32 %v1216_v2  ;;  %v1214_v4 = vmul.f32 1.442695, %v1212_v3  ;;  %v2197_v3 = vld [vmem:[%s3121_s11 + $0x30] sm:$0xff] }
 0xd3a   :  { %2541 = vpow2.f32 %v1214_v4  ;;  %v2196_v4 = vld [vmem:[%s3121_s11 + $0x28] sm:$0xff] }
 0xd3d   :  { %v1412_v33 = vpop.xlane.xlu0 %1411 }
 0xd3e   :  { %v1416_v31 = vsub.f32 %v1408_v59, %v1412_v33  ;;  %v2195_v33 = vld [vmem:[%s3121_s11 + $0x20] sm:$0xff] }
 0xd40   :  { %v1418_v5 = vmul.f32 1.442695, %v1416_v31 }
 0xd41   :  { %v1415_v49 = vpop.xlane.xlu0 %1414 }
 0xd42   :  { %2543 = vpow2.f32 %v1418_v5  ;;  %v1417_v6 = vsub.f32 %v1409_v61, %v1415_v49 }
 0xd44   :  { %v1420_v7 = vmul.f32 1.442695, %v1417_v6 }
 0xd45   :  { %v2540_v46 = vpop.eup %2539 }
 0xd46   :  { %2545 = vpow2.f32 %v1420_v7  ;;  %v1221_v8 = vsel %vm217_vm1, %v2540_v46, 0.0 }
 0xd47   :  { %v2542_v9 = vpop.eup %2541  ;;  %1222 = vadd.xlane.f32.xlu1 %v1221_v8 }
 0xd48   :  { %v1218_v10 = vsel %vm217_vm1, %v2542_v9, 0.0 }
 0xd49   :  { %1219 = vadd.xlane.f32.xlu0 %v1218_v10 }
 0xd4f   :  { %v2544_v11 = vpop.eup %2543 }
 0xd50   :  { %v1422_v12 = vsel %vm217_vm1, %v2544_v11, 0.0 }
 0xd51   :  { %1423 = vadd.xlane.f32.xlu0 %v1422_v12 }
 0xd53   :  { %v2546_v13 = vpop.eup %2545 }
 0xd54   :  { %v1425_v14 = vsel %vm217_vm1, %v2546_v13, 0.0 }
 0xd55   :  { %1426 = vadd.xlane.f32.xlu1 %v1425_v14 }
 0xd66   :  { %1228 = vrot.lane.b32.xlu1 %v2931_v38, %s2594_s25 }
 0xd67   :  { %1230 = vrot.lane.b32.xlu0 %v2929_v36, %s2594_s25 }
 0xd6a   :  { %1434 = vrot.lane.b32.xlu1 %v2929_v36, %s2595_s26  ;;  %v2185_v36 = vld [vmem:[%s3117_s7 + $0x30] sm:$0xff] }
 0xd6e   :  { %1432 = vrot.lane.b32.xlu1 %v2931_v38, %s2595_s26  ;;  %v2183_v38 = vld [vmem:[%s3117_s7 + $0x20] sm:$0xff] }
 0xdd0   :  { %v1223_v15 = vpop.xlane.xlu1 %1222 }
 0xdd1   :  { %2547 = vrcp.f32 %v1223_v15 }
 0xdd2   :  { %v1220_v16 = vpop.xlane.xlu0 %1219 }
 0xdd3   :  { %2549 = vrcp.f32 %v1220_v16 }
 0xdda   :  { %v1424_v17 = vpop.xlane.xlu0 %1423 }
 0xddb   :  { %2551 = vrcp.f32 %v1424_v17 }
 0xdde   :  { %v1427_v18 = vpop.xlane.xlu1 %1426  ;;  %v1231_v19 = vpop.permute.xlu0 %1230 }
 0xddf   :  { %v2548_v20 = vpop.eup %2547  ;;  %2553 = vrcp.f32 %v1427_v18  ;;  %2418 = vmatprep.subr.mxu0 %v1231_v19  ;;  %v2210_v18 = vld [vmem:[%s3123_s13 + $0x78] sm:$0xff] }
 0xde0   :  { %v2550_v21 = vpop.eup %2549  ;;  %2419 = vmatpush3.msra.mxu0 %v1231_v19  ;;  %v1227_v24 = vmul.f32 %v2548_v20, %v2540_v46  ;;  %v2209_v19 = vld [vmem:[%s3123_s13 + $0x70] sm:$0xff]  ;;  %v2208_v20 = vld [vmem:[%s3123_s13 + $0x68] sm:$0xff] }
 0xde1   :  { %v1226_v22 = vmul.f32 %v2550_v21, %v2542_v9  ;;  %v2193_v9 = vld [vmem:[%s3119_s9 + $0x1] ss:$0 sm:$0xff]  ;;  %s3146_s9 = sld [smem:[#allocation7_spill]] }
 0xde2   :  { %v1229_v23 = vpop.permute.xlu1 %1228  ;;  %v2207_v21 = vld [vmem:[%s3123_s13 + $0x60] sm:$0xff] }
 0xde3   :  { %2420 = vmatprep.subr.mxu0 %v1229_v23  ;;  %2422 = vmatprep.mubr.msk.f32.mxu0 %vm217_vm1, %v1226_v22  ;;  %v2206_v22 = vld [vmem:[%s3123_s13 + $0x58] sm:$0xff] }
 0xde4   :  { %2421 = vmatpush3.msra.mxu0 %v1229_v23  ;;  %v2205_v23 = vld [vmem:[%s3123_s13 + $0x50] sm:$0xff] }
 0xde5   :  { %2423 = vmatmul.mubr.msk.f32.vlgmr.msra.gmra.mxu0 %vm217_vm1, %v1227_v24  ;;  %v2204_v24 = vld [vmem:[%s3123_s13 + $0x48] sm:$0xff] }
 0xde6   :  { %v1435_v25 = vpop.permute.xlu1 %1434 }
 0xde7   :  { %2432 = vmatprep.subr.mxu0 %v1435_v25 }
 0xde8   :  { %v2552_v26 = vpop.eup %2551  ;;  %2433 = vmatpush3.msra.mxu0 %v1435_v25  ;;  %v2203_v25 = vld [vmem:[%s3123_s13 + $0x40] sm:$0xff] }
 0xde9   :  { %v1430_v27 = vmul.f32 %v2552_v26, %v2544_v11  ;;  %v2194_v11 = vld [vmem:[%s3120_s10 + $0x1] ss:$0 sm:$0xff] }
 0xdea   :  { %v1433_v28 = vpop.permute.xlu1 %1432  ;;  %v2200_v26 = vld [vmem:[%s3122_s12 + $0x1] ss:$0 sm:$0xff] }
 0xdeb   :  { %2434 = vmatprep.subr.mxu0 %v1433_v28  ;;  %2436 = vmatprep.mubr.msk.f32.mxu0 %vm217_vm1, %v1430_v27 }
 0xdec   :  { %v2554_v29 = vpop.eup %2553  ;;  %2435 = vmatpush3.msra.mxu0 %v1433_v28 }
 0xded   :  { %v1431_v34 = vmul.f32 %v2554_v29, %v2546_v13  ;;  %2439 = vmatprep.subr.mxu0 %v2186_v35 }
 0xdef   :  { %2437 = vmatmul.mubr.msk.f32.vlgmr.msra.gmra.mxu0 %vm217_vm1, %v1431_v34 }
 0xdf0   :  { %2440 = vmatpush3.msra.mxu0 %v2186_v35 }
 0xdf1   :  { %2441 = vmatprep.subr.mxu0 %v2185_v36 }
 0xdf2   :  { %2442 = vmatpush3.msra.mxu0 %v2185_v36 }
 0xdf3   :  { %2443 = vmatprep.subr.mxu0 %v2184_v37 }
 0xdf4   :  { %2444 = vmatpush3.msra.mxu0 %v2184_v37 }
 0xdf5   :  { %2445 = vmatprep.subr.mxu0 %v2183_v38 }
 0xdf6   :  { %2446 = vmatpush3.msra.mxu0 %v2183_v38 }
 0xdf7   :  { %2461 = vmatprep.subr.mxu0 %v2210_v18 }
 0xea5   :  { %v2424_v39 = vpop.f32.mrf.mxu0 }
 0xea7   :  { %v1306_v40 = vpop.f32.mrf.mxu0 }
 0xeaf   :  { %v2438_v41 = vpop.f32.mrf.mxu0 }
 0xeb0   :  { %1523 = vrot.lane.b32.xlu1 %v2438_v41, %s2596_s2 }
 0xeb1   :  { %v1510_v42 = vpop.f32.mrf.mxu0 }
 0xeb2   :  { %1521 = vrot.lane.b32.xlu0 %v1510_v42, %s2596_s2 }
 0xf22   :  { %v1524_v43 = vpop.permute.xlu1 %1523 }
 0xf23   :  { %v1528_v47 = vsel %vm217_vm1, %v2424_v39, %v1524_v43 }
 0xf24   :  { %v1522_v44 = vpop.permute.xlu0 %1521 }
 0xf25   :  { %v1527_v45 = vsel %vm217_vm1, %v1306_v40, %v1522_v44 }
 0xf26   :  { %2447 = vmatprep.mubr.msk.f32.mxu0 %vm75_vm0, %v1527_v45 }
 0xf27   :  { %2448 = vmatmul.mubr.msk.f32.vlgmr.msra.gmra.mxu0 %vm75_vm0, %v1528_v47 }
 0xf28   :  { %2462 = vmatpush3.msra.mxu0 %v2210_v18 }
 0xf29   :  { %2463 = vmatprep.subr.mxu0 %v2209_v19 }
 0xf2a   :  { %2464 = vmatpush3.msra.mxu0 %v2209_v19 }
 0xf2b   :  { %2465 = vmatprep.subr.mxu0 %v2208_v20 }
 0xf2c   :  { %2466 = vmatpush3.msra.mxu0 %v2208_v20 }
 0xf2d   :  { %2467 = vmatprep.subr.mxu0 %v2207_v21 }
 0xf2e   :  { %2468 = vmatpush3.msra.mxu0 %v2207_v21  ;;  %v1929_v21 = vld [vmem:[%s3146_s9] sm:$0x3] }
 0xf2f   :  { %2469 = vmatprep.subr.mxu0 %v2206_v22 }
 0xf30   :  { %2470 = vmatpush3.msra.mxu0 %v2206_v22  ;;  %v2006_v22 = vld [vmem:[%s3127_s17 + $0x18] sm:$0xff] }
 0xf31   :  { %2471 = vmatprep.subr.mxu0 %v2205_v23 }
 0xf32   :  { %2472 = vmatpush3.msra.mxu0 %v2205_v23  ;;  %v2005_v23 = vld [vmem:[%s3127_s17 + $0x10] sm:$0xff] }
 0xf33   :  { %2473 = vmatprep.subr.mxu0 %v2204_v24 }
 0xf34   :  { %2474 = vmatpush3.msra.mxu0 %v2204_v24  ;;  %v2004_v24 = vld [vmem:[%s3127_s17 + $0x8] sm:$0xff] }
 0xf35   :  { %2475 = vmatprep.subr.mxu0 %v2203_v25 }
 0xf36   :  { %2476 = vmatpush3.msra.mxu0 %v2203_v25  ;;  %v2003_v25 = vld [vmem:[%s3127_s17] sm:$0xff] }
 0xfe7   :  { %v2449_v50 = vpop.f32.mrf.mxu0 }
 0xfe8   :  { %v1620_v51 = vadd.f32 %v2449_v50, %v2188_v48 }
 0xfe9   :  { %v1614_v52 = vpop.f32.mrf.mxu0 }
 0xfea   :  { %v1615_v53 = vadd.f32 %v2188_v48, %v1614_v52  ;;  %v1624_v54 = vadd.f32 %v1620_v51, %v2920_v32 }
 0xfec   :  { %v1632_v55 = vsel %vm75_vm0, %v1624_v54, 0.0  ;;  %v1623_v56 = vadd.f32 %v1615_v53, %v2918_v30  ;;  %v2198_v30 = vld [vmem:[%s3121_s11 + $0x38] sm:$0xff] }
 0xfed   :  { %1633 = vadd.xlane.f32.xlu1 %v1632_v55  ;;  %2450 = vmatprep.subr.mxu1 %v2198_v30  ;;  %v2212_v55 = vld [vmem:[%s3124_s14 + $0x1] ss:$0 sm:$0xff] }
 0xfee   :  { %v1629_v57 = vsel %vm75_vm0, %v1623_v56, 0.0  ;;  %2451 = vmatpush3.msra.mxu1 %v2198_v30 }
 0xfef   :  { %1630 = vadd.xlane.f32.xlu0 %v1629_v57  ;;  %2452 = vmatprep.subr.mxu1 %v2197_v3 }
 0xff0   :  { %2453 = vmatpush3.msra.mxu1 %v2197_v3 }
 0xff1   :  { %2454 = vmatprep.subr.mxu1 %v2196_v4 }
 0xff2   :  { %2455 = vmatpush3.msra.mxu1 %v2196_v4 }
 0xff3   :  { %2456 = vmatprep.subr.mxu1 %v2195_v33 }
 0xff4   :  { %2457 = vmatpush3.msra.mxu1 %v2195_v33 }
0x1076   :  { %v1634_v58 = vpop.xlane.xlu1 %1633 }
0x1077   :  { %v1636_v59 = vmul.f32 0.03125, %v1634_v58 }
0x1078   :  { %v1631_v60 = vpop.xlane.xlu0 %1630 }
0x1079   :  { %v1635_v61 = vmul.f32 0.03125, %v1631_v60  ;;  %v1638_v62 = vsub.f32 %v1624_v54, %v1636_v59 }
0x107b   :  { %v1637_v63 = vsub.f32 %v1623_v56, %v1635_v61  ;;  %v1640_v2 = vmul.f32 %v1638_v62, %v1638_v62 }
0x107d   :  { %v1639_v0 = vmul.f32 %v1637_v63, %v1637_v63  ;;  %v1644_v32 = vsel %vm75_vm0, %v1640_v2, 0.0 }
0x107f   :  { %v1641_v1 = vsel %vm75_vm0, %v1639_v0, 0.0 }
0x1080   :  { %1642 = vadd.xlane.f32.xlu0 %v1641_v1 }
0x1084   :  { %1645 = vadd.xlane.f32.xlu0 %v1644_v32 }
0x1109   :  { %v1643_v31 = vpop.xlane.xlu0 %1642 }
0x110a   :  { %v1647_v5 = vmul.f32 0.03125, %v1643_v31 }
0x110c   :  { %v1649_v49 = vadd.f32 1e-12, %v1647_v5 }
0x110d   :  { %v1646_v6 = vpop.xlane.xlu0 %1645 }
0x110e   :  { %2555 = vrsqrt.f32 %v1649_v49  ;;  %v1648_v7 = vmul.f32 0.03125, %v1646_v6  ;;  %v2597_v49 = vmov 0.0  }
0x110f   :  { %2480 = vmatprep.subr.mxu1 %v2597_v49 }
0x1110   :  { %v1650_v46 = vadd.f32 1e-12, %v1648_v7 }
0x1112   :  { %2557 = vrsqrt.f32 %v1650_v46 }
0x111b   :  { %v2556_v8 = vpop.eup %2555 }
0x111c   :  { %v1653_v10 = vmul.f32 %v2556_v8, %v1637_v63 }
0x111e   :  { %v1661_v12 = vmul.f32 %v2193_v9, %v1653_v10 }
0x111f   :  { %v2558_v13 = vpop.eup %2557 }
0x1120   :  { %v1654_v14 = vmul.f32 %v2558_v13, %v1638_v62  ;;  %v3028_v15 = vadd.f32 %v2194_v11, %v1661_v12  ;;  %v2217_v12 = vld [vmem:[%s3125_s15 + $0x1] ss:$0 sm:$0xff] }
0x1122   :  { %v1662_v16 = vmul.f32 %v2193_v9, %v1654_v14  ;;  %2458 = vmatprep.mubr.msk.f32.mxu1 %vm75_vm0, %v3028_v15 }
0x1124   :  { %v1670_v17 = vadd.f32 %v2194_v11, %v1662_v16 }
0x1126   :  { %2459 = vmatmul.mubr.msk.f32.vlgmr.msra.gmra.mxu1 %vm75_vm0, %v1670_v17 }
0x1127   :  { %2484 = vmatprep.mubr.msk.f32.mxu1 %vm2598_vm3, %v2597_v49 }
0x11e6   :  { %v2460_v27 = vpop.f32.mrf.mxu1 }
0x11e7   :  { %v1762_v28 = vadd.f32 %v2460_v27, %v2200_v26 }
0x11e8   :  { %v1756_v29 = vpop.f32.mrf.mxu1 }
0x11e9   :  { %v1766_v34 = vmul.f32 %v1762_v28, %v1762_v28  ;;  %v1757_v35 = vadd.f32 %v2200_v26, %v1756_v29 }
0x11eb   :  { %v1768_v36 = vmul.f32 %v1766_v34, %v1762_v28  ;;  %v1765_v37 = vmul.f32 %v1757_v35, %v1757_v35 }
0x11ed   :  { %v1770_v38 = vmul.f32 0.044715, %v1768_v36  ;;  %v1767_v39 = vmul.f32 %v1765_v37, %v1757_v35 }
0x11ef   :  { %v1772_v40 = vadd.f32 %v1770_v38, %v1762_v28  ;;  %v1769_v41 = vmul.f32 0.044715, %v1767_v39 }
0x11f1   :  { %v1774_v42 = vmul.f32 0.7978846, %v1772_v40  ;;  %v1771_v43 = vadd.f32 %v1769_v41, %v1757_v35 }
0x11f3   :  { %2559 = vtanh.f32 %v1774_v42  ;;  %v1773_v44 = vmul.f32 0.7978846, %v1771_v43 }
0x11f5   :  { %2561 = vtanh.f32 %v1773_v44 }
0x1200   :  { %v2560_v45 = vpop.eup %2559 }
0x1201   :  { %v1778_v47 = vadd.f32 1.0, %v2560_v45 }
0x1202   :  { %v2562_v48 = vpop.eup %2561 }
0x1203   :  { %v1777_v50 = vadd.f32 1.0, %v2562_v48  ;;  %v1780_v51 = vmul.f32 0.5, %v1778_v47  ;;  %v2222_v47 = vld [vmem:[%s3129_s19] ss:$0 sm:$0xff] }
0x1205   :  { %v1779_v52 = vmul.f32 0.5, %v1777_v50  ;;  %v1782_v54 = vmul.f32 %v1780_v51, %v1762_v28  ;;  %v2220_v28 = vld [vmem:[%s3128_s18] ss:$0 sm:$0xff] }
0x1206   :  { %v2223_v50 = vld [vmem:[%s3130_s20] ss:$0 sm:$0xff] }
0x1207   :  { %v1781_v53 = vmul.f32 %v1779_v52, %v1757_v35 }
0x1209   :  { %2477 = vmatprep.mubr.msk.f32.mxu0 %vm891_vm2, %v1781_v53 }
0x120a   :  { %2478 = vmatmul.mubr.msk.f32.vlgmr.msra.gmra.mxu0 %vm891_vm2, %v1782_v54 }
0x12ca   :  { %v2479_v56 = vpop.f32.mrf.mxu0 }
0x12cb   :  { %v1878_v57 = vadd.f32 %v2479_v56, %v2212_v55 }
0x12cc   :  { %v1872_v58 = vpop.f32.mrf.mxu0 }
0x12cd   :  { %v1873_v59 = vadd.f32 %v2212_v55, %v1872_v58  ;;  %v1882_v60 = vadd.f32 %v1878_v57, %v1670_v17 }
0x12cf   :  { %v1890_v61 = vsel %vm75_vm0, %v1882_v60, 0.0  ;;  %v1881_v62 = vadd.f32 %v1873_v59, %v3028_v15  ;;  %v2218_v15 = vld [vmem:[%s3126_s16 + $0x1] ss:$0 sm:$0xff] }
0x12d0   :  { %1891 = vadd.xlane.f32.xlu0 %v1890_v61 }
0x12d1   :  { %v1887_v63 = vsel %vm75_vm0, %v1881_v62, 0.0 }
0x12d2   :  { %1888 = vadd.xlane.f32.xlu1 %v1887_v63 }
0x1359   :  { %v1892_v0 = vpop.xlane.xlu0 %1891 }
0x135a   :  { %v1894_v1 = vmul.f32 0.03125, %v1892_v0 }
0x135b   :  { %v1889_v2 = vpop.xlane.xlu1 %1888 }
0x135c   :  { %v1896_v32 = vsub.f32 %v1882_v60, %v1894_v1  ;;  %v1893_v30 = vmul.f32 0.03125, %v1889_v2 }
0x135e   :  { %v1895_v3 = vsub.f32 %v1881_v62, %v1893_v30  ;;  %v1898_v4 = vmul.f32 %v1896_v32, %v1896_v32 }
0x1360   :  { %v1902_v33 = vsel %vm75_vm0, %v1898_v4, 0.0  ;;  %v1897_v31 = vmul.f32 %v1895_v3, %v1895_v3 }
0x1361   :  { %1903 = vadd.xlane.f32.xlu0 %v1902_v33 }
0x1362   :  { %v1899_v5 = vsel %vm75_vm0, %v1897_v31, 0.0 }
0x1363   :  { %1900 = vadd.xlane.f32.xlu1 %v1899_v5 }
0x13ea   :  { %v1904_v6 = vpop.xlane.xlu0 %1903 }
0x13eb   :  { %v1906_v7 = vmul.f32 0.03125, %v1904_v6 }
0x13ec   :  { %v1901_v46 = vpop.xlane.xlu1 %1900 }
0x13ed   :  { %v1908_v8 = vadd.f32 1e-12, %v1906_v7  ;;  %v1905_v9 = vmul.f32 0.03125, %v1901_v46 }
0x13ef   :  { %2563 = vrsqrt.f32 %v1908_v8  ;;  %v1907_v10 = vadd.f32 1e-12, %v1905_v9 }
0x13f1   :  { %2565 = vrsqrt.f32 %v1907_v10 }
0x13fc   :  { %v2564_v11 = vpop.eup %2563 }
0x13fd   :  { %v1912_v13 = vmul.f32 %v2564_v11, %v1896_v32 }
0x13fe   :  { %v2566_v14 = vpop.eup %2565 }
0x13ff   :  { %v1920_v16 = vmul.f32 %v2217_v12, %v1912_v13  ;;  %v1911_v17 = vmul.f32 %v2566_v14, %v1895_v3 }
0x1401   :  { %v1928_v18 = vadd.f32 %v2218_v15, %v1920_v16  ;;  %v1919_v19 = vmul.f32 %v2217_v12, %v1911_v17 }
0x1403   :  { %2481 = vmatpush3.msra.mxu1 %v1928_v18  ;;  %v1927_v20 = vadd.f32 %v2218_v15, %v1919_v19 }
0x1404   :  { %2482 = vmatprep.subr.mxu1 %v2597_v49 }
0x1405   :  { %2483 = vmatpush3.msra.mxu1 %v1927_v20 }
0x1406   :  { %2485 = vmatmul.mubr.msk.f32.vlgmr.msra.gmra.mxu1 %vm217_vm1, %v1929_v21  ;;  %2487 = vmatprep.subr.mxu1 %v2597_v49 }
0x1407   :  { %2488 = vmatpush3.msra.mxu1 %v2006_v22  ;;  %2495 = vmatprep.mubr.msk.f32.mxu1 %vm2598_vm3, %v2597_v49 }
0x1408   :  { %2489 = vmatprep.subr.mxu1 %v2597_v49 }
0x1409   :  { %2490 = vmatpush3.msra.mxu1 %v2005_v23 }
0x140a   :  { %2491 = vmatprep.subr.mxu1 %v2597_v49 }
0x140b   :  { %2492 = vmatpush3.msra.mxu1 %v2004_v24 }
0x140c   :  { %2493 = vmatprep.subr.mxu1 %v2597_v49 }
0x140d   :  { %2494 = vmatpush3.msra.mxu1 %v2003_v25 }
0x14c6   :  { %v1999_v26 = vpop.f32.mrf.mxu1 }
0x14c7   :  { %2496 = vmatmul.mubr.msk.f32.vlgmr.msra.gmra.mxu1 %vm75_vm0, %v1999_v26 }
0x14c8   :  { %v2486_v27 = vpop.f32.mrf.mxu1 }
0x1587   :  { %v2083_v29 = vpop.f32.mrf.mxu1 }
0x1588   :  { %v2084_v34 = vadd.f32 %v2220_v28, %v2083_v29 }
0x1589   :  { %v2497_v35 = vpop.f32.mrf.mxu1 }
0x158a   :  { %v2090_v36 = vsel %vm2089_vm4, %v2084_v34, 0.0 }
0x158b   :  { %2091 = vadd.xlane.f32.xlu0 %v2090_v36 }
0x1614   :  { %v2092_v37 = vpop.xlane.xlu0 %2091 }
0x1615   :  { %v2094_v38 = vmul.f32 0.0625, %v2092_v37 }
0x1617   :  { %v2095_v39 = vsub.f32 %v2084_v34, %v2094_v38 }
0x1619   :  { %v2096_v40 = vmul.f32 %v2095_v39, %v2095_v39 }
0x161b   :  { %v2097_v41 = vsel %vm2089_vm4, %v2096_v40, 0.0 }
0x161c   :  { %2098 = vadd.xlane.f32.xlu1 %v2097_v41 }
0x16a5   :  { %v2099_v42 = vpop.xlane.xlu1 %2098 }
0x16a6   :  { %v2100_v43 = vmul.f32 0.0625, %v2099_v42 }
0x16a8   :  { %v2101_v44 = vadd.f32 1e-05, %v2100_v43 }
0x16aa   :  { %2567 = vrsqrt.f32 %v2101_v44 }
0x16b7   :  { %v2568_v45 = vpop.eup %2567 }
0x16b8   :  { %v2103_v48 = vmul.f32 %v2568_v45, %v2095_v39 }
0x16ba   :  { %v2110_v51 = vmul.f32 %v2222_v47, %v2103_v48 }
0x16bc   :  { %v2117_v52 = vadd.f32 %v2223_v50, %v2110_v51 }
0x16be   :  { %2118 = vst.msk [vmem:[#allocation2] sm:$0x3] %vm2089_vm4, %v2117_v52 }
0x16bf   :  { %2580 = shalt.err (!%p2577_p4)
}
0x16c0   :  { %2128 = dma.vmem_to_hbm [thread:$0]  %s2126_s22, 32, %s3131_s21, [#allocation3]  }
0x16c1   :  { %2589 = dma.done.wait [#allocation3], 32  }
0x16c2   :  { %2590 = vsyncadd [#allocation3], 4294967264 }
0x16c3   :  { %2132 = vsyncpa [#allocation3], 1 }

</bundles_post_ra>
